<compile_context>
chip_gen: v7x
topology: tpu7x:2x2x1
jax: 0.10.0
libtpu: 0.0.40
codegen_flags: <defaults>
</compile_context>

<pallas_src>
import math
import numpy as np
import jax
import jax.numpy as jnp
from jax import lax
from jax.experimental import pallas as pl
from jax.experimental.pallas import tpu as pltpu

_EPS = float(np.spacing(1.0))  # dcase_util uses numpy.spacing(1)
_LANE = 128


# ----------------------------- parameter setup (host-side numpy, __init__ only) --

def _hz_to_mel(f):
    f = np.asarray(f, dtype=np.float64)
    f_sp = 200.0 / 3.0
    mels = f / f_sp
    min_log_hz = 1000.0
    min_log_mel = min_log_hz / f_sp
    logstep = np.log(6.4) / 27.0
    return np.where(f >= min_log_hz,
                    min_log_mel + np.log(np.maximum(f, min_log_hz) / min_log_hz) / logstep,
                    mels)


def _mel_to_hz(m):
    m = np.asarray(m, dtype=np.float64)
    f_sp = 200.0 / 3.0
    freqs = f_sp * m
    min_log_hz = 1000.0
    min_log_mel = min_log_hz / f_sp
    logstep = np.log(6.4) / 27.0
    return np.where(m >= min_log_mel,
                    min_log_hz * np.exp(logstep * (m - min_log_mel)),
                    freqs)


def _mel_filterbank(sr, n_fft, n_mels, fmin, fmax):
    """librosa.filters.mel equivalent (htk=False, norm='slaney'), shape (n_bins, n_mels)."""
    n_bins = n_fft // 2 + 1
    fftfreqs = np.linspace(0.0, sr / 2.0, n_bins)
    mel_pts = _mel_to_hz(np.linspace(_hz_to_mel(fmin), _hz_to_mel(fmax), n_mels + 2))
    fdiff = np.diff(mel_pts)
    ramps = mel_pts[:, None] - fftfreqs[None, :]
    lower = -ramps[:-2] / fdiff[:-1, None]
    upper = ramps[2:] / fdiff[1:, None]
    weights = np.maximum(0.0, np.minimum(lower, upper))          # (n_mels, n_bins)
    enorm = 2.0 / (mel_pts[2: n_mels + 2] - mel_pts[:n_mels])    # slaney normalization
    weights = weights * enorm[:, None]
    return weights.T.astype(np.float64)                          # (n_bins, n_mels)


def _hamming_periodic(win_length):
    n = np.arange(win_length, dtype=np.float64)
    return 0.54 - 0.46 * np.cos(2.0 * np.pi * n / win_length)


def _rdft_matrices(n_fft):
    """Real-DFT basis: re = x @ C, im = x @ S  (shapes (n_fft, n_bins)), float64."""
    n_bins = n_fft // 2 + 1
    n = np.arange(n_fft, dtype=np.float64)[:, None]
    k = np.arange(n_bins, dtype=np.float64)[None, :]
    ang = 2.0 * np.pi * n * k / n_fft
    return np.cos(ang), -np.sin(ang)


def _round_up(x, m):
    return ((x + m - 1) // m) * m


# ----------------------------- module wrapper + Pallas kernel ---------------------

class Cnn3MelPallas:
    """Pallas equivalent of Cnn3Mel: log-mel magnitude spectrogram extractor."""

    def __init__(self, sr=2000, hop_length_seconds=0.02, win_length_seconds=0.04,
                 n_mels=40, n_fft=128, fmin=0.0, fmax=None,
                 compute_dtype=jnp.bfloat16, tm_max=1024):
        fmax = sr / 2.0 if fmax is None else fmax
        self.n_fft = int(n_fft)
        self.hop = int(round(hop_length_seconds * sr))
        self.win_length = int(round(win_length_seconds * sr))
        assert self.win_length <= self.n_fft
        self.n_mels = int(n_mels)
        self.tm_max = int(tm_max)
        self.compute_dtype = np.dtype(compute_dtype)
        self._precision = (lax.Precision.HIGHEST
                           if self.compute_dtype == np.dtype(np.float32) else None)

        n_bins = self.n_fft // 2 + 1
        pad_bins = _round_up(n_bins, _LANE)                 # e.g. 65 -> 128
        n_shifts = -(-self.n_fft // self.hop)               # A = ceil(n_fft / hop)
        a_pad = max(8, _round_up(n_shifts, 8))              # sublane-aligned tail view
        self._n_bins = n_bins
        self._pad_bins = pad_bins
        self._n_shifts = n_shifts
        self._a_pad = a_pad
        self._quantum = math.lcm(_LANE, a_pad)              # frame-tile granularity

        # hamming_asymmetric == periodic hamming, zero-padded (centered) to n_fft
        win = _hamming_periodic(self.win_length)
        pad_l = (self.n_fft - self.win_length) // 2
        win_full = np.zeros((self.n_fft,), np.float64)
        win_full[pad_l: pad_l + self.win_length] = win

        # Window folded into the rDFT basis: (x*w) @ C == x @ (diag(w) @ C)
        cos_m, sin_m = _rdft_matrices(self.n_fft)           # (n_fft, n_bins) f64
        dftW = np.zeros((self.n_fft, 2 * pad_bins), np.float64)
        dftW[:, :n_bins] = win_full[:, None] * cos_m
        dftW[:, pad_bins: pad_bins + n_bins] = win_full[:, None] * sin_m

        # Per-shift slabs for in-kernel framing:
        #   spec[k, t] = sum_a sum_r dft_shift[a, k, r] * samples[(t+a)*hop + r]
        dft_shift = np.zeros((n_shifts, 2 * pad_bins, self.hop), np.float64)
        for a in range(n_shifts):
            n0 = a * self.hop
            n1 = min(self.n_fft, n0 + self.hop)
            dft_shift[a, :, : n1 - n0] = dftW[n0:n1, :].T
        self.dft_shift = jnp.asarray(dft_shift, dtype=self.compute_dtype)

        # '+eps' on the waveform folded into a per-bin bias: eps * colsum(W*DFT)
        self.bias = jnp.asarray((_EPS * dftW.sum(axis=0))[:, None], dtype=jnp.float32)

        # Mel filterbank, transposed so the kernel emits (n_mels, T) directly.
        mel_fb = _mel_filterbank(sr, self.n_fft, self.n_mels, fmin, fmax)  # (n_bins, n_mels)
        mel_t = np.zeros((self.n_mels, pad_bins), np.float64)
        mel_t[:, :n_bins] = mel_fb.T
        self.mel_t = jnp.asarray(mel_t, dtype=self.compute_dtype)

        # f64 copies kept only for the host-side numpy reference in __main__
        self._ref_dftW = dftW
        self._ref_mel = mel_fb

        self._forward = jax.jit(self._forward_impl)

    # ------------------------- Pallas kernel --------------------------------

    def _make_kernel(self, tm):
        n_shifts = self._n_shifts
        pad_bins = self._pad_bins
        cdt = self.compute_dtype
        prec = self._precision
        eps = _EPS

        def kernel(rows_a_ref, rows_b_ref, dft_ref, mel_ref, bias_ref, out_ref,
                   chunk_ref):
            # Assemble the contiguous sample rows this tile needs: tm rows plus the
            # first a_pad rows of the next tile (frames overlap tiles by A-1 rows).
            chunk_ref[:tm, :] = rows_a_ref[0].astype(cdt)
            chunk_ref[tm:, :] = rows_b_ref[0].astype(cdt)

            # Windowed real DFT as A shifted matmuls (contract over the hop axis),
            # f32 accumulation on the MXU.  spec columns are frames (lane axis).
            acc = jnp.zeros((2 * pad_bins, tm), jnp.float32)
            for a in range(n_shifts):
                xa = chunk_ref[a: a + tm, :]                              # (tm, hop)
                acc = acc + lax.dot_general(
                    dft_ref[a], xa,
                    dimension_numbers=(((1,), (1,)), ((), ())),
                    preferred_element_type=jnp.float32,
                    precision=prec)
            spec = acc + bias_ref[...]                                    # + eps*colsum(W)

            re = spec[:pad_bins, :]
            im = spec[pad_bins:, :]
            mag = jnp.sqrt(re * re + im * im)                             # (pad_bins, tm)
            mel = jnp.dot(mel_ref[...], mag.astype(cdt),
                          preferred_element_type=jnp.float32,
                          precision=prec)                                 # (n_mels, tm)
            out_ref[0] = jnp.log(mel + eps)

        return kernel

    # ------------------------- forward ---------------------------------------

    def _forward_impl(self, x):
        B, L = x.shape
        half = self.n_fft // 2
        assert L > half, "reflect padding (center=True) needs num_samples > n_fft // 2"

        # center=True reflect padding; the original's 'y = wav + eps' is folded into
        # the in-kernel per-bin bias (reflect(x + eps) == reflect(x) + eps).
        padded = jnp.pad(x, ((0, 0), (half, half)), mode="reflect")
        n_samples = padded.shape[1]
        n_frames = 1 + (n_samples - self.n_fft) // self.hop

        hop = self.hop
        a_pad = self._a_pad
        quantum = self._quantum
        tm = min(_round_up(self.tm_max, quantum), _round_up(n_frames, quantum))
        t_tiles = -(-n_frames // tm)
        if B * t_tiles < 2 and n_frames > quantum:
            # keep >=2 grid blocks so v7x can shard across both TensorCores
            tm = _round_up(-(-n_frames // 2), quantum)
            t_tiles = -(-n_frames // tm)
        t_pad = t_tiles * tm
        rows_pad = t_pad + a_pad
        total = rows_pad * hop
        padded = jnp.pad(padded, ((0, 0), (0, total - n_samples)))
        wav2d = padded.reshape(B, rows_pad, hop)             # contiguous sample rows

        n_mels = self.n_mels
        pad_bins = self._pad_bins
        n_shifts = self._n_shifts

        cost = pl.CostEstimate(
            flops=2 * B * t_pad * (n_shifts * 2 * pad_bins * hop + n_mels * pad_bins),
            transcendentals=B * t_pad * (pad_bins + n_mels),        # sqrt + log
            bytes_accessed=(4 * B * (rows_pad * hop + t_tiles * a_pad * hop
                                     + n_mels * t_pad)
                            + int(self.dft_shift.size * self.dft_shift.dtype.itemsize)
                            + int(self.mel_t.size * self.mel_t.dtype.itemsize)
                            + int(self.bias.size * 4)),
        )

        out = pl.pallas_call(
            self._make_kernel(tm),
            out_shape=jax.ShapeDtypeStruct((B, n_mels, t_pad), jnp.float32),
            grid=(B, t_tiles),
            in_specs=[
                # tm contiguous sample rows of this tile
                pl.BlockSpec((1, tm, hop), lambda b, i: (b, i, 0)),
                # first a_pad rows of the next tile (frame overlap across the tile edge)
                pl.BlockSpec((1, a_pad, hop),
                             lambda b, i: (b, (i + 1) * (tm // a_pad), 0)),
                # resident operands
                pl.BlockSpec((n_shifts, 2 * pad_bins, hop), lambda b, i: (0, 0, 0)),
                pl.BlockSpec((n_mels, pad_bins), lambda b, i: (0, 0)),
                pl.BlockSpec((2 * pad_bins, 1), lambda b, i: (0, 0)),
            ],
            out_specs=pl.BlockSpec((1, n_mels, tm), lambda b, i: (b, 0, i)),
            scratch_shapes=[pltpu.VMEM((tm + a_pad, hop), self.compute_dtype)],
            compiler_params=pltpu.CompilerParams(
                dimension_semantics=("parallel", "parallel")),
            cost_estimate=cost,
        )(wav2d, wav2d, self.dft_shift, self.mel_t, self.bias)

        return out[:, :, :n_frames]                          # (B, n_mels, T) directly

    def __call__(self, x):
        """x: (B, num_samples) float32 waveforms -> (B, n_mels, n_frames) float32."""
        return self._forward(jnp.asarray(x, jnp.float32))


# ----------------------------- host-side numpy reference (sanity check) ----------

def _reference_logmel(x_np, ext):
    eps = _EPS
    half = ext.n_fft // 2
    outs = []
    for wav in np.asarray(x_np, np.float64):
        y = wav + eps
        yp = np.pad(y, (half, half), mode="reflect")
        n_frames = 1 + (len(yp) - ext.n_fft) // ext.hop
        idx = np.arange(n_frames)[:, None] * ext.hop + np.arange(ext.n_fft)[None, :]
        frames = yp[idx]                                     # (T, n_fft)
        spec = frames @ ext._ref_dftW                        # (T, 2*pad_bins)
        re = spec[:, :ext._pad_bins]
        im = spec[:, ext._pad_bins:]
        mag = np.sqrt(re * re + im * im)
        mel = mag[:, :ext._n_bins] @ ext._ref_mel            # (T, n_mels)
        outs.append(np.log(mel + eps).T)                     # (n_mels, T)
    return np.stack(outs)


# ----------------------------- main ------------------------------------------------

if __name__ == "__main__":
    key = jax.random.PRNGKey(0)
    B, L = 2, 1024
    x = jax.random.normal(key, (B, L), dtype=jnp.float32)

    extractor = Cnn3MelPallas(sr=2000, hop_length_seconds=0.02,
                              win_length_seconds=0.04, n_mels=40, n_fft=128,
                              fmin=0.0, fmax=1000.0)
    mel = extractor(x)
    jax.block_until_ready(mel)

    n_frames = 1 + L // extractor.hop
    assert mel.shape == (B, 40, n_frames)
    assert bool(jnp.all(jnp.isfinite(mel)))

    # sanity check against a float64 numpy reference (tolerance covers bf16 operands)
    ref = _reference_logmel(np.asarray(x), extractor)
    err = float(np.max(np.abs(np.asarray(mel, np.float64) - ref)))
    assert err < 0.1, f"log-mel mismatch vs reference: max abs err {err}"

    print("KERNEL_OK")
</pallas_src>

<mosaic_0001>
module attributes {stable_mosaic.version = 11 : i64} {
  func.func @kernel(%arg0: i32, %arg1: i32, %arg2: memref<1x128x40xf32, #tpu.memory_space<vmem>>, %arg3: memref<1x8x40xf32, #tpu.memory_space<vmem>>, %arg4: memref<4x256x40xbf16, #tpu.memory_space<vmem>>, %arg5: memref<40x128xbf16, #tpu.memory_space<vmem>>, %arg6: memref<256x1xf32, #tpu.memory_space<vmem>>, %arg7: memref<1x40x128xf32, #tpu.memory_space<vmem>>, %arg8: memref<136x40xbf16, #tpu.memory_space<vmem>>) attributes {dimension_semantics = [#tpu.dimension_semantics<parallel>, #tpu.dimension_semantics<parallel>], iteration_bounds = array<i64: 2, 1>, scalar_prefetch = 0 : i64, scratch_operands = 1 : i64, tpu.core_type = #tpu.core_type<tc>, window_params = [{transform_indices = @transform_0, window_bounds = array<i64: 1, 128, 40>}, {transform_indices = @transform_1, window_bounds = array<i64: 1, 8, 40>}, {pipeline_mode = #tpu.pipeline_mode<synchronous>, transform_indices = @transform_2, window_bounds = array<i64: 4, 256, 40>}, {pipeline_mode = #tpu.pipeline_mode<synchronous>, transform_indices = @transform_3, window_bounds = array<i64: 40, 128>}, {pipeline_mode = #tpu.pipeline_mode<synchronous>, transform_indices = @transform_4, window_bounds = array<i64: 256, 1>}, {transform_indices = @transform_5, window_bounds = array<i64: 1, 40, 128>}]} {
    %c0 = arith.constant 0 : index
    %c0_0 = arith.constant 0 : index
    %c0_1 = arith.constant 0 : index
    %0 = vector.load %arg2[%c0, %c0_0, %c0_1] : memref<1x128x40xf32, #tpu.memory_space<vmem>>, vector<1x128x40xf32>
    %1 = vector.shape_cast %0 : vector<1x128x40xf32> to vector<128x40xf32>
    %2 = arith.truncf %1 : vector<128x40xf32> to vector<128x40xbf16>
    %c0_2 = arith.constant 0 : index
    %c0_3 = arith.constant 0 : index
    %3 = vector.load %arg8[%c0_2, %c0_3] : memref<136x40xbf16, #tpu.memory_space<vmem>>, vector<128x40xbf16>
    tpu.vector_store %arg8[%c0_2, %c0_3], %2 {strides = array<i32>} : memref<136x40xbf16, #tpu.memory_space<vmem>>, vector<128x40xbf16>,
    %c0_4 = arith.constant 0 : index
    %c0_5 = arith.constant 0 : index
    %c0_6 = arith.constant 0 : index
    %4 = vector.load %arg3[%c0_4, %c0_5, %c0_6] : memref<1x8x40xf32, #tpu.memory_space<vmem>>, vector<1x8x40xf32>
    %5 = vector.shape_cast %4 : vector<1x8x40xf32> to vector<8x40xf32>
    %6 = arith.truncf %5 : vector<8x40xf32> to vector<8x40xbf16>
    %c128 = arith.constant 128 : index
    %c0_7 = arith.constant 0 : index
    %7 = vector.load %arg8[%c128, %c0_7] : memref<136x40xbf16, #tpu.memory_space<vmem>>, vector<8x40xbf16>
    tpu.vector_store %arg8[%c128, %c0_7], %6 {strides = array<i32>} : memref<136x40xbf16, #tpu.memory_space<vmem>>, vector<8x40xbf16>,
    %cst = arith.constant 0.000000e+00 : f32
    %8 = vector.broadcast %cst : f32 to vector<256x128xf32>
    %c0_8 = arith.constant 0 : index
    %c0_9 = arith.constant 0 : index
    %9 = vector.load %arg8[%c0_8, %c0_9] : memref<136x40xbf16, #tpu.memory_space<vmem>>, vector<128x40xbf16>
    %c0_10 = arith.constant 0 : index
    %c0_11 = arith.constant 0 : index
    %c0_12 = arith.constant 0 : index
    %10 = vector.load %arg4[%c0_10, %c0_11, %c0_12] : memref<4x256x40xbf16, #tpu.memory_space<vmem>>, vector<1x256x40xbf16>
    %11 = vector.shape_cast %10 : vector<1x256x40xbf16> to vector<256x40xbf16>
    %cst_13 = arith.constant dense<0.000000e+00> : vector<256x128xf32>
    %12 = tpu.matmul %11, %9, %cst_13 {dimension_numbers = #tpu.dot_dimension_numbers<[1], [1], [0], [0], [0, 0, 1, 0], [], []>} : vector<256x40xbf16>, vector<128x40xbf16>, vector<256x128xf32> -> vector<256x128xf32>
    %13 = arith.addf %8, %12 : vector<256x128xf32>
    %c1 = arith.constant 1 : index
    %c0_14 = arith.constant 0 : index
    %14 = vector.load %arg8[%c1, %c0_14] : memref<136x40xbf16, #tpu.memory_space<vmem>>, vector<128x40xbf16>
    %c1_15 = arith.constant 1 : index
    %c0_16 = arith.constant 0 : index
    %c0_17 = arith.constant 0 : index
    %15 = vector.load %arg4[%c1_15, %c0_16, %c0_17] : memref<4x256x40xbf16, #tpu.memory_space<vmem>>, vector<1x256x40xbf16>
    %16 = vector.shape_cast %15 : vector<1x256x40xbf16> to vector<256x40xbf16>
    %cst_18 = arith.constant dense<0.000000e+00> : vector<256x128xf32>
    %17 = tpu.matmul %16, %14, %cst_18 {dimension_numbers = #tpu.dot_dimension_numbers<[1], [1], [0], [0], [0, 0, 1, 0], [], []>} : vector<256x40xbf16>, vector<128x40xbf16>, vector<256x128xf32> -> vector<256x128xf32>
    %18 = arith.addf %13, %17 : vector<256x128xf32>
    %c2 = arith.constant 2 : index
    %c0_19 = arith.constant 0 : index
    %19 = vector.load %arg8[%c2, %c0_19] : memref<136x40xbf16, #tpu.memory_space<vmem>>, vector<128x40xbf16>
    %c2_20 = arith.constant 2 : index
    %c0_21 = arith.constant 0 : index
    %c0_22 = arith.constant 0 : index
    %20 = vector.load %arg4[%c2_20, %c0_21, %c0_22] : memref<4x256x40xbf16, #tpu.memory_space<vmem>>, vector<1x256x40xbf16>
    %21 = vector.shape_cast %20 : vector<1x256x40xbf16> to vector<256x40xbf16>
    %cst_23 = arith.constant dense<0.000000e+00> : vector<256x128xf32>
    %22 = tpu.matmul %21, %19, %cst_23 {dimension_numbers = #tpu.dot_dimension_numbers<[1], [1], [0], [0], [0, 0, 1, 0], [], []>} : vector<256x40xbf16>, vector<128x40xbf16>, vector<256x128xf32> -> vector<256x128xf32>
    %23 = arith.addf %18, %22 : vector<256x128xf32>
    %c3 = arith.constant 3 : index
    %c0_24 = arith.constant 0 : index
    %24 = vector.load %arg8[%c3, %c0_24] : memref<136x40xbf16, #tpu.memory_space<vmem>>, vector<128x40xbf16>
    %c3_25 = arith.constant 3 : index
    %c0_26 = arith.constant 0 : index
    %c0_27 = arith.constant 0 : index
    %25 = vector.load %arg4[%c3_25, %c0_26, %c0_27] : memref<4x256x40xbf16, #tpu.memory_space<vmem>>, vector<1x256x40xbf16>
    %26 = vector.shape_cast %25 : vector<1x256x40xbf16> to vector<256x40xbf16>
    %cst_28 = arith.constant dense<0.000000e+00> : vector<256x128xf32>
    %27 = tpu.matmul %26, %24, %cst_28 {dimension_numbers = #tpu.dot_dimension_numbers<[1], [1], [0], [0], [0, 0, 1, 0], [], []>} : vector<256x40xbf16>, vector<128x40xbf16>, vector<256x128xf32> -> vector<256x128xf32>
    %28 = arith.addf %23, %27 : vector<256x128xf32>
    %c0_29 = arith.constant 0 : index
    %c0_30 = arith.constant 0 : index
    %29 = vector.load %arg6[%c0_29, %c0_30] : memref<256x1xf32, #tpu.memory_space<vmem>>, vector<256x1xf32>
    %30 = vector.broadcast %29 : vector<256x1xf32> to vector<256x128xf32>
    %31 = arith.addf %28, %30 : vector<256x128xf32>
    %32 = vector.extract_strided_slice %31 {offsets = [0, 0], sizes = [128, 128], strides = [1, 1]} : vector<256x128xf32> to vector<128x128xf32>
    %33 = vector.extract_strided_slice %31 {offsets = [128, 0], sizes = [128, 128], strides = [1, 1]} : vector<256x128xf32> to vector<128x128xf32>
    %34 = arith.mulf %32, %32 : vector<128x128xf32>
    %35 = arith.mulf %33, %33 : vector<128x128xf32>
    %36 = arith.addf %34, %35 : vector<128x128xf32>
    %37 = math.sqrt %36 : vector<128x128xf32>
    %c0_31 = arith.constant 0 : index
    %c0_32 = arith.constant 0 : index
    %38 = vector.load %arg5[%c0_31, %c0_32] : memref<40x128xbf16, #tpu.memory_space<vmem>>, vector<40x128xbf16>
    %39 = arith.truncf %37 : vector<128x128xf32> to vector<128x128xbf16>
    %cst_33 = arith.constant dense<0.000000e+00> : vector<40x128xf32>
    %40 = tpu.matmul %38, %39, %cst_33 {dimension_numbers = #tpu.dot_dimension_numbers<[1], [0], [0], [1], [0, 0, 1, 1], [], []>} : vector<40x128xbf16>, vector<128x128xbf16>, vector<40x128xf32> -> vector<40x128xf32>
    %cst_34 = arith.constant 2.22044605E-16 : f32
    %41 = vector.broadcast %cst_34 : f32 to vector<40x128xf32>
    %42 = arith.addf %40, %41 : vector<40x128xf32>
    %43 = math.log %42 : vector<40x128xf32>
    %c0_35 = arith.constant 0 : index
    %c0_36 = arith.constant 0 : index
    %c0_37 = arith.constant 0 : index
    %44 = vector.load %arg7[%c0_35, %c0_36, %c0_37] : memref<1x40x128xf32, #tpu.memory_space<vmem>>, vector<1x40x128xf32>
    %45 = vector.shape_cast %44 : vector<1x40x128xf32> to vector<40x128xf32>
    %46 = vector.shape_cast %43 : vector<40x128xf32> to vector<1x40x128xf32>
    tpu.vector_store %arg7[%c0_35, %c0_36, %c0_37], %46 {strides = array<i32>} : memref<1x40x128xf32, #tpu.memory_space<vmem>>, vector<1x40x128xf32>,
    return
  }
  func.func @transform_0(%arg0: i32, %arg1: i32) -> (i32, i32, i32) {
    %c0_i32 = arith.constant 0 : i32
    %c0_i32_0 = arith.constant 0 : i32
    return %arg0, %arg1, %c0_i32 : i32, i32, i32
  }
  func.func @transform_1(%arg0: i32, %arg1: i32) -> (i32, i32, i32) {
    %c1_i32 = arith.constant 1 : i32
    %0 = arith.addi %arg1, %c1_i32 : i32
    %c16_i32 = arith.constant 16 : i32
    %1 = arith.muli %0, %c16_i32 : i32
    %c0_i32 = arith.constant 0 : i32
    %c0_i32_0 = arith.constant 0 : i32
    return %arg0, %1, %c0_i32 : i32, i32, i32
  }
  func.func @transform_2(%arg0: i32, %arg1: i32) -> (i32, i32, i32) {
    %c0_i32 = arith.constant 0 : i32
    %c0_i32_0 = arith.constant 0 : i32
    %c0_i32_1 = arith.constant 0 : i32
    %c0_i32_2 = arith.constant 0 : i32
    return %c0_i32, %c0_i32_0, %c0_i32_1 : i32, i32, i32
  }
  func.func @transform_3(%arg0: i32, %arg1: i32) -> (i32, i32) {
    %c0_i32 = arith.constant 0 : i32
    %c0_i32_0 = arith.constant 0 : i32
    %c0_i32_1 = arith.constant 0 : i32
    return %c0_i32, %c0_i32_0 : i32, i32
  }
  func.func @transform_4(%arg0: i32, %arg1: i32) -> (i32, i32) {
    %c0_i32 = arith.constant 0 : i32
    %c0_i32_0 = arith.constant 0 : i32
    %c0_i32_1 = arith.constant 0 : i32
    return %c0_i32, %c0_i32_0 : i32, i32
  }
  func.func @transform_5(%arg0: i32, %arg1: i32) -> (i32, i32, i32) {
    %c0_i32 = arith.constant 0 : i32
    %c0_i32_0 = arith.constant 0 : i32
    return %arg0, %c0_i32, %arg1 : i32, i32, i32
  }
}

</mosaic_0001>

<bundles_post_ra>
// kernel: _forward_impl.1
= control target key start
LH: loop header
LB: loop body
LE: loop exit
PB: predicated region body
PF: predicated region fallthrough
CT: control target
= control target key end

     0   :  { %10 = vsyncpa [#allocation4], 0  ;;  %s3702_s18 = smov 0   ;;  %s3704_s19 = smov 0   ;;  %s4731_s0 = inlined_call_operand.vmem [shape: f32[2,136,40], index: 0, kind: input, shape index: {}, may-alias: {0,1}]   ;;  %s4732_s1 = inlined_call_operand.vmem [shape: f32[2,136,40], index: 1, kind: input, shape index: {}, may-alias: {0,1}]   ;;  %s4733_s2 = inlined_call_operand.vmem [shape: bf16[4,256,40], index: 2, kind: input, shape index: {}]   ;;  %s4734_s3 = inlined_call_operand.vmem [shape: bf16[40,128], index: 3, kind: input, shape index: {}]   ;;  %s4735_s4 = inlined_call_operand.hbm [shape: f32[256,1], index: 4, kind: input, shape index: {}]   ;;  %s4736_s5 = inlined_call_operand.vmem [shape: f32[2,40,128], index: 5, kind: output, shape index: {}]  }
   0x1   :  { %s3706_s20 = smov 0  }
   0x2 LB: > { %s2681_s21 = sadd.s32 4294967295, %s3664_s20   ;;  %s28_s22 = sadd.s32 1, %s3660_s19  ;;  %s3664_s20 = sphi %s3706_s20, %s16_s20   ;;  %s3660_s19 = sphi %s3704_s19, %s4773_s19   ;;  %s3656_s18 = sphi %s3702_s18, %s4772_s18  }
   0x3   : > { %p30_p0 = scmp.ge.s32.totalorder %s28_s22, 2  ;;  %p2683_p1 = scmp.ge.s32.totalorder %s3664_s20, 1 }
   0x4   : > { %p184_p2 = scmp.lt.s32.totalorder %s3664_s20, 3  ;;  %p3727_p4 = scmp.eq.s32.totalorder %s2681_s21, 0 }
   0x5   : > { %s4775_s22 = smov (%p30_p0, %s28_s22), 0  ;;  %s3666_s25 = smov [#allocation3]  }
   0x6   : > { %p3723_p3 = pnand %p2683_p1, %p184_p2  ;;  %s202_s26 = sshll.u32 %s3666_s25, 4  ;;  %s203_s26 = int_to_ptr.vmem [resolvable:$true] %s202_s26 }
   0x7   : > { %s4743_s24 = scalar_select %p3727_p4, 1, 0 }
   0x8   : > { %s4742_s23 = scalar_select %p3723_p3, 1, 0 }
   0x9   : > { %p3451_p5 = pneg %p3723_p3  ;;  %s3610_s30 = scalar_lea.hbm %s4735_s4, 4096 }
   0xa   : > { %p3611_p7 = scmp.ne.s32.totalorder %s4735_s4, %s3610_s30  ;;  %p3617_p11 = scmp.lt.u32.totalorder %s3610_s30, %s4735_s4 }
   0xb   : > { %p3735_p6 = pnand %p3727_p4, %p3451_p5 }
   0xd   : > { %p3612_p8 = pneg %p3735_p6 }
   0xf   : > { %p3613_p9 = pnand %p3612_p8, %p3611_p7 }
  0x11   : > { %p3614_p10 = pneg %p3613_p9 }
  0x13   : > { %p3619_p12 = pnand %p3617_p11, %p3614_p10 }
  0x15   : > { %3622 = shalt.err (!%p3619_p12)
}
  0x16   : > { %s3623_s10 = scalar_lea.vmem %s203_s26, 4096  ;;  %p3631_p2 = scmp.lt.s32.totalorder %s203_s26, %s203_s26 }
  0x17   : > { %p3624_p13 = scmp.ne.s32.totalorder %s203_s26, %s3623_s10  ;;  %p3632_p5 = scmp.lt.s32.totalorder %s3623_s10, %s3623_s10 }
  0x19   : > { %p3626_p0 = pnand %p3624_p13, %p3612_p8  ;;  %p3633_p4 = por %p3632_p5, %p3631_p2 }
  0x1b   : > { %p3627_p1 = pneg %p3626_p0 }
  0x1d   : > { %p3634_p3 = pnand %p3633_p4, %p3627_p1 }
  0x1f   : > { %3637 = shalt.err (!%p3634_p3)
}
  0x20   : > { %s3667_s11 = smov 128   ;;  %s3668_s12 = smov 8  }
  0x21   : > { %3454 = dma.hbm_to_vmem [thread:$0]  (!%p3735_p6), %s4735_s4, 4096, %s203_s26, [#allocation4], %s3667_s11, %s3667_s11, %s3668_s12  }
  0x22   : > { %p4745_p7 = scmp.ne.s32.totalorder %s4742_s23, 0 }
  0x24   : > { %254 = sbr.rel (%p4745_p7) target bundleno = 774 (0x306), region = 40 }
  0x2b   : > { %p4746_p9 = scmp.ne.s32.totalorder %s4743_s24, 0 }
  0x2d   : > { %3651 = dma.done.wait (%p4746_p9), [#allocation4], 4096  }
  0x2e   : > { %3653 = vsyncadd (%p4746_p9), [#allocation4], 4294963200  ;;  %p308_p3 = scmp.lt.s32.totalorder %s3656_s18, 1  ;;  %vm422_vm0 = vcmask 322560   ;;  %v3499_v32 = vld [vmem:[%s4733_s2] sm:$0xff]   ;;  %vm716_vm1 = vcmask 326656  }
  0x2f   : > { %3136 = vmatprep.mubr.msk.bf16.mxu0 %vm716_vm1, %v3499_v32  ;;  %vm647_vm2 = vsmask.f32 7424  ;;  %v3504_v58 = vld [vmem:[%s4733_s2 + $0x80] sm:$0xff]   ;;  %vm1772_vm3 = vsmask.f32 6400  ;;  %vm1372_vm4 = vcmask 1046528  }
  0x30   : > { %s4777_s18 = smov (!%p308_p3, %s3656_s18), 1  ;;  %3088 = vmatprep.mubr.msk.bf16.mxu1 %vm716_vm1, %v3504_v58  ;;  %vm3671_vm5 = vmmov 0  }
  0x31   : > { %s3444_s15 = smul.u32 136, %s4777_s18 }
  0x32   : > { %s3446_s10 = smul.u32 40, %s4777_s18 }
  0x33   : > { %s3769_s21 = scalar_lea.vmem %s4731_s0, %s3444_s15  ;;  %s3777_s23 = sadd.s32 128, %s3444_s15 }
  0x34   : > { %v342_v0 = vld [vmem:[%s3769_s21] sm:$0xff]  ;;  %v343_v1 = vld [vmem:[%s3769_s21 + $0x8] sm:$0xff]  ;;  %v344_v2 = vld [vmem:[%s3769_s21 + $0x10] sm:$0xff]  ;;  %s330_s26 = scalar_lea.vmem %s4732_s1, %s3777_s23  ;;  %s340_s13 = scalar_lea.vmem %s4736_s5, %s3446_s10 }
  0x35   : > { %v2949_v3 = vpack.c.bf16 %v342_v0, %v342_v0  ;;  %v2950_v4 = vpack.c.bf16 %v343_v1, %v343_v1  ;;  %v345_v5 = vld [vmem:[%s3769_s21 + $0x18] sm:$0xff]  ;;  %v2951_v6 = vpack.c.bf16 %v344_v2, %v344_v2  ;;  %v346_v7 = vld [vmem:[%s3769_s21 + $0x20] sm:$0xff]  ;;  %v347_v8 = vld [vmem:[%s3769_s21 + $0x28] sm:$0xff] }
  0x36   : > { %v2952_v9 = vpack.c.bf16 %v345_v5, %v345_v5  ;;  %v2953_v10 = vpack.c.bf16 %v346_v7, %v346_v7  ;;  %v2954_v11 = vpack.c.bf16 %v347_v8, %v347_v8  ;;  %v348_v12 = vld [vmem:[%s3769_s21 + $0x30] sm:$0xff]  ;;  %v349_v13 = vld [vmem:[%s3769_s21 + $0x38] sm:$0xff]  ;;  %v350_v14 = vld [vmem:[%s3769_s21 + $0x40] sm:$0xff] }
  0x37   : > { %423 = vst.msk [vmem:[#allocation2] sm:$0xf] %vm422_vm0, %v2949_v3  ;;  %424 = vst.msk [vmem:[#allocation2 + $0x4] sm:$0xf] %vm422_vm0, %v2950_v4  ;;  %v2955_v15 = vpack.c.bf16 %v348_v12, %v348_v12  ;;  %v2956_v16 = vpack.c.bf16 %v349_v13, %v349_v13  ;;  %v351_v17 = vld [vmem:[%s3769_s21 + $0x48] sm:$0xff]  ;;  %v2957_v18 = vpack.c.bf16 %v350_v14, %v350_v14  ;;  %v352_v19 = vld [vmem:[%s3769_s21 + $0x50] sm:$0xff] }
  0x38   : > { %425 = vst.msk [vmem:[#allocation2 + $0x8] sm:$0xf] %vm422_vm0, %v2951_v6  ;;  %v353_v20 = vld [vmem:[%s3769_s21 + $0x58] sm:$0xff]  ;;  %426 = vst.msk [vmem:[#allocation2 + $0xc] sm:$0xf] %vm422_vm0, %v2952_v9  ;;  %v2958_v21 = vpack.c.bf16 %v351_v17, %v351_v17  ;;  %v2959_v22 = vpack.c.bf16 %v352_v19, %v352_v19  ;;  %v354_v24 = vld [vmem:[%s3769_s21 + $0x60] sm:$0xff] }
  0x39   : > { %427 = vst.msk [vmem:[#allocation2 + $0x10] sm:$0xf] %vm422_vm0, %v2953_v10  ;;  %428 = vst.msk [vmem:[#allocation2 + $0x14] sm:$0xf] %vm422_vm0, %v2954_v11  ;;  %v2960_v23 = vpack.c.bf16 %v353_v20, %v353_v20  ;;  %v355_v25 = vld [vmem:[%s3769_s21 + $0x68] sm:$0xff]  ;;  %v356_v26 = vld [vmem:[%s3769_s21 + $0x70] sm:$0xff]  ;;  %v2961_v27 = vpack.c.bf16 %v354_v24, %v354_v24 }
  0x3a   : > { %429 = vst.msk [vmem:[#allocation2 + $0x18] sm:$0xf] %vm422_vm0, %v2955_v15  ;;  %430 = vst.msk [vmem:[#allocation2 + $0x1c] sm:$0xf] %vm422_vm0, %v2956_v16  ;;  %v2962_v28 = vpack.c.bf16 %v355_v25, %v355_v25  ;;  %v357_v29 = vld [vmem:[%s3769_s21 + $0x78] sm:$0xff]  ;;  %v2963_v30 = vpack.c.bf16 %v356_v26, %v356_v26  ;;  %v439_v33 = vld [vmem:[%s330_s26] sm:$0xff] }
  0x3b   : > { %431 = vst.msk [vmem:[#allocation2 + $0x20] sm:$0xf] %vm422_vm0, %v2957_v18  ;;  %432 = vst.msk [vmem:[#allocation2 + $0x24] sm:$0xf] %vm422_vm0, %v2958_v21  ;;  %v2964_v31 = vpack.c.bf16 %v357_v29, %v357_v29  ;;  %v440_v34 = vpack.c.bf16 %v439_v33, %v439_v33 }
  0x3c   : > { %433 = vst.msk [vmem:[#allocation2 + $0x28] sm:$0xf] %vm422_vm0, %v2959_v22  ;;  %434 = vst.msk [vmem:[#allocation2 + $0x2c] sm:$0xf] %vm422_vm0, %v2960_v23 }
  0x3d   : > { %435 = vst.msk [vmem:[#allocation2 + $0x30] sm:$0xf] %vm422_vm0, %v2961_v27  ;;  %436 = vst.msk [vmem:[#allocation2 + $0x34] sm:$0xf] %vm422_vm0, %v2962_v28 }
  0x3e   : > { %437 = vst.msk [vmem:[#allocation2 + $0x38] sm:$0xf] %vm422_vm0, %v2963_v30  ;;  %438 = vst.msk [vmem:[#allocation2 + $0x3c] sm:$0xf] %vm422_vm0, %v2964_v31  ;;  %v442_v35 = vld [vmem:[#allocation2] sm:$0xf] }
  0x3f   : > { %v3813_v36 = vld [vmem:[#allocation2 + $0x4] sm:$0xf]  ;;  %441 = vst.msk [vmem:[#allocation2 + $0x40] sm:$0xf] %vm422_vm0, %v440_v34  ;;  %v3817_v38 = vld [vmem:[#allocation2 + $0x8] sm:$0xff]  }
  0x40   : > { %v2755_v37 = vcombine.low %v442_v35, %v3813_v36  ;;  %v3819_v39 = vld [vmem:[#allocation2 + $0x10] sm:$0xff]   ;;  %v656_v43 = vshll.u32 %v3817_v38, 16  ;;  %v660_v44 = vshrl.u32 %v3817_v38, 16  ;;  %v1080_v52 = vsel %vm716_vm1, %v3817_v38, 0 }
  0x41   : > { %v664_v45 = vshll.u32 %v3819_v39, 16  ;;  %v3828_v47 = vld [vmem:[#allocation2 + $0x18] sm:$0xff]   ;;  %v668_v54 = vshrl.u32 %v3819_v39, 16  ;;  %v1082_v62 = vsel %vm716_vm1, %v3819_v39, 0 }
  0x42   : > { %3412 = vmatprep.subr.msk.bf16.mxu0 %vm716_vm1, %v2755_v37  ;;  %v1078_v40 = vsel %vm716_vm1, %v2755_v37, 0  ;;  %v649_v41 = vshrl.u32 %v2755_v37, 16  ;;  %v651_v42 = vshll.u32 %v2755_v37, 16  ;;  %v658_v48 = vrot.slane %v656_v43, 1  ;;  %v3848_v61 = vld [vmem:[#allocation2 + $0x20] sm:$0xff]  }
  0x43   : > { %3121 = vmatpush3.bf16.xpose.msra.mxu0 %v1078_v40  ;;  %v666_v49 = vrot.slane %v664_v45, 1  ;;  %v672_v55 = vshll.u32 %v3828_v47, 16  ;;  %v676_v1 = vshrl.u32 %v3828_v47, 16  ;;  %v680_v2 = vshll.u32 %v3848_v61, 16  ;;  %v3858_v3 = vld [vmem:[#allocation2 + $0x28] sm:$0xff]  }
  0x44   : > { %3413 = vmatprep.subr.msk.bf16.mxu0 %vm716_vm1, %v3817_v38  ;;  %v653_v46 = vrot.slane %v651_v42, 1  ;;  %v662_v51 = vor.u32 %v660_v44, %v658_v48  ;;  %v1084_v6 = vsel %vm716_vm1, %v3828_v47, 0  ;;  %v684_v7 = vshrl.u32 %v3848_v61, 16  ;;  %v3871_v17 = vld [vmem:[#allocation2 + $0x30] sm:$0xff]  }
  0x45   : > { %v670_v59 = vor.u32 %v668_v54, %v666_v49  ;;  %v674_v60 = vrot.slane %v672_v55, 1  ;;  %v682_v5 = vrot.slane %v680_v2, 1  ;;  %v1785_v8 = vrot.slane %v668_v54, 1  ;;  %v3888_v32 = vld [vmem:[#allocation2 + $0x38] sm:$0xff]  }
  0x46   : > { %v654_v50 = vor.u32 %v653_v46, %v649_v41  ;;  %v667_v57 = vsel %vm647_vm2, %v662_v51, %v666_v49  ;;  %v1786_v9 = vrot.slane %v664_v45, 2  ;;  %v688_v11 = vshll.u32 %v3858_v3, 16 }
  0x47   : > { %v769_v63 = vsel %vm716_vm1, %v667_v57, 0  ;;  %v675_v0 = vsel %vm647_vm2, %v670_v59, %v674_v60  ;;  %v678_v4 = vor.u32 %v676_v1, %v674_v60  ;;  %v1789_v13 = vrot.slane %v676_v1, 1 }
  0x48   : > { %v659_v53 = vsel %vm647_vm2, %v654_v50, %v658_v48  ;;  %v772_v10 = vsel %vm716_vm1, %v675_v0, 0  ;;  %v1790_v14 = vrot.slane %v672_v55, 2  ;;  %v3868_v15 = vor.u32 %v1786_v9, %v1785_v8  ;;  %v3906_v55 = vld [vmem:[#allocation2 + $0x40] ss:$0 sps:$4 sm:$0x11]  }
  0x49   : > { %3404 = vmatprep.subr.msk.bf16.mxu1 %vm716_vm1, %v659_v53  ;;  %v766_v56 = vsel %vm716_vm1, %v659_v53, 0  ;;  %v683_v12 = vsel %vm647_vm2, %v678_v4, %v682_v5  ;;  %v686_v18 = vor.u32 %v684_v7, %v682_v5  ;;  %v690_v19 = vrot.slane %v688_v11, 1 }
  0x4a   : > { %3073 = vmatpush3.bf16.xpose.msra.mxu1 %v766_v56  ;;  %v1791_v16 = vor.u32 %v1790_v14, %v1789_v13  ;;  %v1793_v21 = vrot.slane %v684_v7, 1  ;;  %v1794_v22 = vrot.slane %v680_v2, 2  ;;  %v1086_v23 = vsel %vm716_vm1, %v3848_v61, 0  ;;  %v1255_v56 = vld [vmem:[#allocation2] sm:$0xe] }
  0x4b   : > { %3123 = vmatpush3.bf16.xpose.msra.mxu0 %v1080_v52  ;;  %3405 = vmatprep.subr.msk.bf16.mxu1 %vm716_vm1, %v667_v57  ;;  %v692_v24 = vshrl.u32 %v3858_v3, 16  ;;  %v775_v25 = vsel %vm716_vm1, %v683_v12, 0  ;;  %v696_v26 = vshll.u32 %v3871_v17, 16  ;;  %v691_v28 = vsel %vm647_vm2, %v686_v18, %v690_v19 }
  0x4c   : > { %3414 = vmatprep.subr.msk.bf16.mxu0 %vm716_vm1, %v3819_v39  ;;  %v3877_v20 = vsel %vm1772_vm3, %v3868_v15, %v1791_v16  ;;  %v1795_v27 = vor.u32 %v1794_v22, %v1793_v21  ;;  %v1798_v31 = vrot.slane %v688_v11, 2  ;;  %v700_v33 = vshrl.u32 %v3871_v17, 16 }
  0x4d   : > { %v1797_v30 = vrot.slane %v692_v24, 1  ;;  %v694_v35 = vor.u32 %v692_v24, %v690_v19  ;;  %v698_v37 = vrot.slane %v696_v26, 1  ;;  %v1802_v42 = vrot.slane %v696_v26, 2 }
  0x4e   : > { %v3886_v29 = vsel %vm1772_vm3, %v1791_v16, %v1795_v27  ;;  %v1801_v40 = vrot.slane %v700_v33, 1  ;;  %v1088_v45 = vsel %vm716_vm1, %v3858_v3, 0  ;;  %v704_v46 = vshll.u32 %v3888_v32, 16 }
  0x4f   : > { %v1799_v34 = vor.u32 %v1798_v31, %v1797_v30  ;;  %v778_v48 = vsel %vm716_vm1, %v691_v28, 0  ;;  %v708_v49 = vshrl.u32 %v3888_v32, 16  ;;  %v699_v51 = vsel %vm647_vm2, %v694_v35, %v698_v37  ;;  %v3506_v31 = vld [vmem:[%s4733_s2 + $0x20] sm:$0xff]  }
  0x50   : > { %v1803_v50 = vor.u32 %v1802_v42, %v1801_v40  ;;  %v1806_v54 = vrot.slane %v704_v46, 2  ;;  %v702_v58 = vor.u32 %v700_v33, %v698_v37  ;;  %v706_v59 = vrot.slane %v704_v46, 1  ;;  %v2083_v35 = vld [vmem:[#allocation3] sm:$0xff]  ;;  %v2084_v42 = vld [vmem:[#allocation3 + $0x8] sm:$0xff]  ;;  %v3509_v46 = vld [vmem:[%s4733_s2 + $0x98] sm:$0xff]  }
  0x51   : > { %v3895_v41 = vsel %vm1772_vm3, %v1795_v27, %v1799_v34  ;;  %v1805_v53 = vrot.slane %v708_v49, 1  ;;  %v712_v2 = vshll.u32 %v3906_v55, 16  ;;  %v1374_v7 = vrot.slane %v3817_v38, 1  ;;  %v3502_v38 = vld [vmem:[%s4733_s2 + $0x10] sm:$0xff]   ;;  %v2099_v40 = vld [vmem:[#allocation3 + $0x80] sm:$0xff] }
  0x52   : > { %3075 = vmatpush3.bf16.xpose.msra.mxu1 %v769_v63  ;;  %v3904_v52 = vsel %vm1772_vm3, %v1799_v34, %v1803_v50  ;;  %v781_v63 = vsel %vm716_vm1, %v699_v51, 0  ;;  %v707_v1 = vsel %vm647_vm2, %v702_v58, %v706_v59  ;;  %v3669_v9 = vmov 0   ;;  %v3508_v34 = vld [vmem:[%s4733_s2 + $0x90] sm:$0xff]   ;;  %v3513_v58 = vld [vmem:[%s4733_s2 + $0xa8] sm:$0xff]  }
  0x53   : > { %3125 = vmatpush3.bf16.xpose.msra.mxu0 %v1082_v62  ;;  %3406 = vmatprep.subr.msk.bf16.mxu1 %vm716_vm1, %v675_v0  ;;  %v3909_v57 = vor.u32 %v1806_v54, %v1805_v53  ;;  %v2860_v62 = vcombine.low %v1255_v56, %v3813_v36  ;;  %v1090_v0 = vsel %vm716_vm1, %v3871_v17, 0  ;;  %v714_v36 = vrot.slane %v712_v2, 1  ;;  %v3512_v53 = vld [vmem:[%s4733_s2 + $0xa0] sm:$0xff]   ;;  %v2085_v54 = vld [vmem:[#allocation3 + $0x10] sm:$0xff] }
  0x54   : > { %3415 = vmatprep.subr.msk.bf16.mxu0 %vm716_vm1, %v3828_v47  ;;  %3488 = vset.pattern.permute.xlu0 %v3669_v9  ;;  %v784_v11 = vsel %vm716_vm1, %v707_v1, 0  ;;  %v1781_v19 = vrot.slane %v660_v44, 1  ;;  %v1378_v27 = vrot.slane %v3828_v47, 1  ;;  %v2086_v56 = vld [vmem:[#allocation3 + $0x18] sm:$0xff] }
  0x55   : > { %v3915_v60 = vsel %vm1772_vm3, %v1803_v50, %v3909_v57  ;;  %v1373_v4 = vrot.slane %v2860_v62, 1  ;;  %v1774_v5 = vshrl.u32 %v2860_v62, 16  ;;  %v1777_v8 = vshll.u32 %v2860_v62, 16  ;;  %3489 = vset.pattern.permute.xlu1 %v3669_v9  ;;  %2117 = vperm.xlu0 %3488, %v2083_v35   ;;  %v3510_v50 = vld [vmem:[%s4733_s2 + $0x30] sm:$0xff]   ;;  %v3511_v62 = vld [vmem:[%s4733_s2 + $0x38] sm:$0xff]   ;;  %v3514_v2 = vld [vmem:[%s4733_s2 + $0x40] sm:$0xff]  }
  0x56   : > { %2197 = vperm.xlu1 %3489, %v2099_v40   ;;  %v2088_v9 = vld [vmem:[#allocation3 + $0x28] sm:$0xff]  ;;  %v2106_v35 = vld [vmem:[#allocation3 + $0xb8] sm:$0xff] }
  0x57   : > { %v1776_v14 = vrot.slane %v1774_v5, 1  ;;  %v1375_v16 = vsel %vm1372_vm4, %v1373_v4, %v1374_v7  ;;  %v1779_v18 = vrot.slane %v1777_v8, 2  ;;  %v2102_v5 = vld [vmem:[#allocation3 + $0x98] sm:$0xff]  ;;  %v3515_v8 = vld [vmem:[%s4733_s2 + $0x48] sm:$0xff]   ;;  %v3526_v40 = vld [vmem:[%s4733_s2 + $0x70] sm:$0xff]  }
  0x58   : > { %v1439_v44 = vsel %vm716_vm1, %v1375_v16, 0 }
  0x59   : > { %v1780_v21 = vor.u32 %v1779_v18, %v1776_v14  ;;  %2122 = vperm.xlu0 %3488, %v2084_v42   ;;  %v2103_v14 = vld [vmem:[#allocation3 + $0xa0] sm:$0xff] }
  0x5a   : > { %3077 = vmatpush3.bf16.xpose.msra.mxu1 %v772_v10  ;;  %v1782_v10 = vrot.slane %v656_v43, 2  ;;  %v1376_v43 = vrot.slane %v3819_v39, 1  ;;  %v3505_v39 = vld [vmem:[%s4733_s2 + $0x88] sm:$0xff]  }
  0x5b   : > { %3127 = vmatpush3.bf16.xpose.msra.mxu0 %v1084_v6  ;;  %3407 = vmatprep.subr.msk.bf16.mxu1 %vm716_vm1, %v683_v12  ;;  %v710_v6 = vor.u32 %v708_v49, %v706_v59  ;;  %v1092_v12 = vsel %vm716_vm1, %v3888_v32, 0  ;;  %v1382_v59 = vrot.slane %v3858_v3, 1  ;;  %v3521_v18 = vld [vmem:[%s4733_s2 + $0xc8] sm:$0xff]  }
  0x5c   : > { %3416 = vmatprep.subr.msk.bf16.mxu0 %vm716_vm1, %v3848_v61  ;;  %v1783_v22 = vor.u32 %v1782_v10, %v1781_v19  ;;  %v1379_v47 = vsel %vm1372_vm4, %v1376_v43, %v1378_v27  ;;  %v4050_v10 = vsel %vm716_vm1, %v3886_v29, 0  ;;  %v1386_v19 = vrot.slane %v3888_v32, 1 }
  0x5d   : > { %v715_v13 = vsel %vm647_vm2, %v710_v6, %v714_v36  ;;  %2127 = vperm.xlu0 %3488, %v2085_v54   ;;  %v2087_v6 = vld [vmem:[#allocation3 + $0x20] sm:$0xff]  ;;  %v3517_v36 = vld [vmem:[%s4733_s2 + $0xb8] sm:$0xff]  }
  0x5e   : > { %v787_v24 = vsel %vm716_vm1, %v715_v13, 0  ;;  %v3949_v26 = vsel %vm1772_vm3, %v1780_v21, %v1783_v22  ;;  %v3980_v37 = vsel %vm1772_vm3, %v1783_v22, %v3868_v15  ;;  %v1380_v15 = vrot.slane %v3848_v61, 1  ;;  %v2089_v21 = vld [vmem:[#allocation3 + $0x30] sm:$0xff]  ;;  %v2107_v54 = vld [vmem:[#allocation3 + $0xc0] sm:$0xff] }
  0x5f   : > { %v3965_v30 = vsel %vm716_vm1, %v3949_v26, 0  ;;  %v3996_v49 = vsel %vm716_vm1, %v3980_v37, 0  ;;  %v4077_v22 = vsel %vm716_vm1, %v3895_v41, 0 }
  0x60   : > { %v1381_v61 = vsel %vm1372_vm4, %v1378_v27, %v1380_v15  ;;  %v1383_v4 = vsel %vm1372_vm4, %v1380_v15, %v1382_v59  ;;  %v3525_v27 = vld [vmem:[%s4733_s2 + $0xd8] sm:$0xff]  }
  0x62   : > { %3079 = vmatpush3.bf16.xpose.msra.mxu1 %v775_v25  ;;  %v1377_v25 = vsel %vm1372_vm4, %v1374_v7, %v1376_v43  ;;  %v1384_v7 = vrot.slane %v3871_v17, 1  ;;  %v3519_v43 = vld [vmem:[%s4733_s2 + $0x58] sm:$0xff]  }
  0x63   : > { %3129 = vmatpush3.bf16.xpose.msra.mxu0 %v1086_v23  ;;  %3408 = vmatprep.subr.msk.bf16.mxu1 %vm716_vm1, %v691_v28  ;;  %v3500_v23 = vld [vmem:[%s4733_s2 + $0x8] sm:$0xff]   ;;  %v3503_v28 = vld [vmem:[%s4733_s2 + $0x18] sm:$0xff]   ;;  %v1442_v33 = vsel %vm716_vm1, %v1377_v25, 0 }
  0x64   : > { %3417 = vmatprep.subr.msk.bf16.mxu0 %vm716_vm1, %v3858_v3  ;;  %v3516_v3 = vld [vmem:[%s4733_s2 + $0xb0] sm:$0xff]  }
  0x6a   : > { %3081 = vmatpush3.bf16.xpose.msra.mxu1 %v778_v48  ;;  %v2100_v48 = vld [vmem:[#allocation3 + $0x88] sm:$0xff] }
  0x6b   : > { %3131 = vmatpush3.bf16.xpose.msra.mxu0 %v1088_v45  ;;  %3409 = vmatprep.subr.msk.bf16.mxu1 %vm716_vm1, %v699_v51  ;;  %v3507_v45 = vld [vmem:[%s4733_s2 + $0x28] sm:$0xff]   ;;  %v1445_v51 = vsel %vm716_vm1, %v1379_v47, 0 }
  0x6c   : > { %3418 = vmatprep.subr.msk.bf16.mxu0 %vm716_vm1, %v3871_v17  ;;  %2202 = vperm.xlu1 %3489, %v2100_v48   ;;  %v3520_v17 = vld [vmem:[%s4733_s2 + $0xc0] sm:$0xff]  }
  0x6d   : > { %v2091_v48 = vld [vmem:[#allocation3 + $0x40] sm:$0xff] }
  0x70   : > { %2132 = vperm.xlu1 %3489, %v2086_v56   ;;  %v4130_v56 = vsel %vm716_vm1, %v3915_v60, 0 }
  0x72   : > { %3083 = vmatpush3.bf16.xpose.msra.mxu1 %v781_v63  ;;  %v2101_v63 = vld [vmem:[#allocation3 + $0x90] sm:$0xff] }
  0x73   : > { %3133 = vmatpush3.bf16.xpose.msra.mxu0 %v1090_v0  ;;  %3410 = vmatprep.subr.msk.bf16.mxu1 %vm716_vm1, %v707_v1  ;;  %v1448_v0 = vsel %vm716_vm1, %v1381_v61, 0  ;;  %v4024_v1 = vsel %vm716_vm1, %v3877_v20, 0 }
  0x74   : > { %3419 = vmatprep.subr.msk.bf16.mxu0 %vm716_vm1, %v3888_v32  ;;  %2207 = vperm.xlu0 %3488, %v2101_v63   ;;  %v3524_v32 = vld [vmem:[%s4733_s2 + $0xd0] sm:$0xff]  }
  0x75   : > { %2212 = vperm.xlu1 %3489, %v2102_v5  }
  0x78   : > { %2137 = vperm.xlu0 %3488, %v2087_v6   ;;  %v3537_v6 = vld [vmem:[%s4733_s2 + $0x190] sm:$0xff]  }
  0x79   : > { %2142 = vperm.xlu1 %3489, %v2088_v9   ;;  %v3536_v9 = vld [vmem:[%s4733_s2 + $0x118] sm:$0xff]  }
  0x7a   : > { %3085 = vmatpush3.bf16.xpose.msra.mxu1 %v784_v11  ;;  %v3518_v11 = vld [vmem:[%s4733_s2 + $0x50] sm:$0xff]  }
  0x7b   : > { %3135 = vmatpush3.bf16.xpose.msra.mxu0 %v1092_v12  ;;  %3411 = vmatprep.subr.msk.bf16.mxu1 %vm716_vm1, %v715_v13  ;;  %v1451_v12 = vsel %vm716_vm1, %v1383_v4, 0  ;;  %v1385_v13 = vsel %vm1372_vm4, %v1382_v59, %v1384_v7 }
  0x7c   : > { %3420 = vmatprep.subr.msk.bf16.mxu0 %vm716_vm1, %v1375_v16  ;;  %v2104_v16 = vld [vmem:[#allocation3 + $0xa8] sm:$0xff]  ;;  %2217 = vperm.xlu0 %3488, %v2103_v14  }
  0x7d   : > { %2222 = vperm.xlu1 %3489, %v2104_v16   ;;  %v2112_v14 = vld [vmem:[#allocation3 + $0xe8] sm:$0xff] }
  0x7e   : > { %v3540_v16 = vld [vmem:[%s4733_s2 + $0x128] sm:$0xff]  }
  0x80   : > { %2147 = vperm.xlu0 %3488, %v2089_v21   ;;  %v3546_v21 = vld [vmem:[%s4733_s2 + $0x1b8] sm:$0xff]  }
  0x82   : > { %3137 = vmatmul.mubr.msk.bf16.vlgmr.msra.gmra.mrb[0].mxu0 %vm716_vm1, %v3500_v23  ;;  %3087 = vmatpush3.bf16.xpose.msra.mxu1 %v787_v24  ;;  %v3522_v23 = vld [vmem:[%s4733_s2 + $0x60] sm:$0xff]   ;;  %v1454_v24 = vsel %vm716_vm1, %v1385_v13, 0 }
  0x83   : > { %3169 = vmatpush3.bf16.xpose.msra.mxu0 %v1439_v44  ;;  %3140 = vmatprep.mubr.msk.bf16.mxu0 %vm716_vm1, %v3502_v38  ;;  %v1387_v38 = vsel %vm1372_vm4, %v1384_v7, %v1386_v19  ;;  %v3534_v44 = vld [vmem:[#allocation2 + $0x40] ss:$0 sps:$4 sm:$0x33]  }
  0x84   : > { %3421 = vmatprep.subr.msk.bf16.mxu0 %vm716_vm1, %v1377_v25  ;;  %3429 = vmatprep.subr.msk.bf16.mxu1 %vm716_vm1, %v3949_v26  ;;  %v2090_v25 = vld [vmem:[#allocation3 + $0x38] sm:$0xff]  ;;  %v1457_v42 = vsel %vm716_vm1, %v1387_v38, 0 }
  0x85   : > { %2152 = vperm.xlu1 %3489, %v2090_v25   ;;  %v2110_v7 = vld [vmem:[#allocation3 + $0xd8] sm:$0xff] }
  0x86   : > { %v3552_v25 = vld [vmem:[%s4733_s2 + $0x158] sm:$0xff]  }
  0x89   : > { %3089 = vmatmul.mubr.msk.bf16.vlgmr.msra.gmra.mrb[0].mxu1 %vm716_vm1, %v3505_v39  ;;  %v2105_v39 = vld [vmem:[#allocation3 + $0xb0] sm:$0xff]  ;;  %2232 = vperm.xlu1 %3489, %v2106_v35   ;;  %v3564_v35 = vld [vmem:[%s4733_s2 + $0x188] sm:$0xff]  }
  0x8a   : > { %3141 = vmatmul.mubr.msk.bf16.gmra.mrb[4].mxu0 %vm716_vm1, %v3503_v28  ;;  %3300 = vmatpush3.bf16.xpose.msra.mxu1 %v3965_v30  ;;  %v1388_v28 = vrot.slane %v3906_v55, 1  ;;  %v3528_v55 = vld [vmem:[%s4733_s2 + $0xe0] sm:$0xff]  }
  0x8b   : > { %3171 = vmatpush3.bf16.xpose.msra.mxu0 %v1442_v33  ;;  %3144 = vmatprep.mubr.msk.bf16.mxu0 %vm716_vm1, %v3506_v31  ;;  %v3523_v31 = vld [vmem:[%s4733_s2 + $0x68] sm:$0xff]   ;;  %v1810_v33 = vshrl.u32 %v3534_v44, 16 }
  0x8c   : > { %3422 = vmatprep.subr.msk.bf16.mxu0 %vm716_vm1, %v1379_v47  ;;  %3092 = vmatprep.mubr.msk.bf16.mxu1 %vm716_vm1, %v3508_v34  ;;  %v1813_v34 = vshll.u32 %v3534_v44, 16  ;;  %v4104_v47 = vsel %vm716_vm1, %v3904_v52, 0  ;;  %v3553_v44 = vld [vmem:[%s4733_s2 + $0x1d0] sm:$0xff]  }
  0x8d   : > { %3431 = vmatprep.subr.msk.bf16.mxu1 %vm716_vm1, %v3980_v37  ;;  %2227 = vperm.xlu0 %3488, %v2105_v39   ;;  %v3557_v39 = vld [vmem:[%s4733_s2 + $0x1e0] sm:$0xff]  }
  0x8e   : > { %v1815_v15 = vrot.slane %v1813_v34, 2  ;;  %v3563_v34 = vld [vmem:[%s4733_s2 + $0x180] sm:$0xff]  }
  0x91   : > { %3093 = vmatmul.mubr.msk.bf16.gmra.mrb[4].mxu1 %vm716_vm1, %v3509_v46  ;;  %v1812_v46 = vrot.slane %v1810_v33, 1  ;;  %2157 = vperm.xlu0 %3488, %v2091_v48   ;;  %v3560_v33 = vld [vmem:[%s4733_s2 + $0x178] sm:$0xff]  }
  0x92   : > { %3145 = vmatmul.mubr.msk.bf16.gmra.mrb[8].mxu0 %vm716_vm1, %v3507_v45  ;;  %3301 = vmatpush3.bf16.xpose.msra.mxu1 %v3996_v49  ;;  %v1389_v45 = vsel %vm1372_vm4, %v1386_v19, %v1388_v28  ;;  %v2098_v19 = vld [vmem:[#allocation3 + $0x78] sm:$0xff]  ;;  %v3561_v28 = vld [vmem:[%s4733_s2 + $0x1f0] sm:$0xff]  }
  0x93   : > { %3173 = vmatpush3.bf16.xpose.msra.mxu0 %v1445_v51  ;;  %3148 = vmatprep.mubr.msk.bf16.mxu0 %vm716_vm1, %v3510_v50  ;;  %v2092_v50 = vld [vmem:[#allocation3 + $0x48] sm:$0xff]  ;;  %v1460_v59 = vsel %vm716_vm1, %v1389_v45, 0 }
  0x94   : > { %3423 = vmatprep.subr.msk.bf16.mxu0 %vm716_vm1, %v1381_v61  ;;  %3096 = vmatprep.mubr.msk.bf16.mxu1 %vm716_vm1, %v3512_v53  ;;  %v3529_v51 = vld [vmem:[%s4733_s2 + $0xe8] sm:$0xff]   ;;  %v3527_v53 = vld [vmem:[%s4733_s2 + $0x78] sm:$0xff]   ;;  %v1816_v61 = vor.u32 %v1815_v15, %v1812_v46 }
  0x95   : > { %3433 = vmatprep.subr.msk.bf16.mxu1 %vm716_vm1, %v3877_v20  ;;  %2162 = vperm.xlu1 %3489, %v2092_v50  }
  0x96   : > { %2237 = vperm.xlu0 %3488, %v2107_v54   ;;  %v4144_v63 = vsel %vm1772_vm3, %v3909_v57, %v1816_v61  ;;  %v3531_v57 = vld [vmem:[%s4733_s2 + $0x108] sm:$0xff]  }
  0x97   : > { %v4160_v5 = vsel %vm716_vm1, %v4144_v63, 0 }
  0x99   : > { %3097 = vmatmul.mubr.msk.bf16.gmra.mrb[8].mxu1 %vm716_vm1, %v3513_v58  ;;  %v3530_v58 = vld [vmem:[%s4733_s2 + $0x100] sm:$0xff]  }
  0x9a   : > { %3149 = vmatmul.mubr.msk.bf16.gmra.mrb[12].mxu0 %vm716_vm1, %v3511_v62  ;;  %3302 = vmatpush3.bf16.xpose.msra.mxu1 %v4024_v1  ;;  %v3532_v62 = vld [vmem:[%s4733_s2 + $0xf0] sm:$0xff]  }
  0x9b   : > { %3175 = vmatpush3.bf16.xpose.msra.mxu0 %v1448_v0  ;;  %3152 = vmatprep.mubr.msk.bf16.mxu0 %vm716_vm1, %v3514_v2  ;;  %v2108_v0 = vld [vmem:[#allocation3 + $0xc8] sm:$0xff]  ;;  %v2093_v2 = vld [vmem:[#allocation3 + $0x50] sm:$0xff] }
  0x9c   : > { %3424 = vmatprep.subr.msk.bf16.mxu0 %vm716_vm1, %v1383_v4  ;;  %3100 = vmatprep.mubr.msk.bf16.mxu1 %vm716_vm1, %v3516_v3  ;;  %v3533_v3 = vld [vmem:[%s4733_s2 + $0xf8] sm:$0xff]  }
  0x9d   : > { %3435 = vmatprep.subr.msk.bf16.mxu1 %vm716_vm1, %v3886_v29  ;;  %2242 = vperm.xlu1 %3489, %v2108_v0   ;;  %v2094_v4 = vld [vmem:[#allocation3 + $0x58] sm:$0xff] }
  0x9e   : > { %2167 = vperm.xlu0 %3488, %v2093_v2  }
  0xa1   : > { %3101 = vmatmul.mubr.msk.bf16.gmra.mrb[12].mxu1 %vm716_vm1, %v3517_v36  ;;  %2172 = vperm.xlu1 %3489, %v2094_v4   ;;  %v2109_v36 = vld [vmem:[#allocation3 + $0xd0] sm:$0xff] }
  0xa2   : > { %3153 = vmatmul.mubr.msk.bf16.gmra.mrb[16].mxu0 %vm716_vm1, %v3515_v8  ;;  %3303 = vmatpush3.bf16.xpose.msra.mxu1 %v4050_v10  ;;  %v3538_v8 = vld [vmem:[%s4733_s2 + $0x198] sm:$0xff]  }
  0xa3   : > { %3177 = vmatpush3.bf16.xpose.msra.mxu0 %v1451_v12  ;;  %3156 = vmatprep.mubr.msk.bf16.mxu0 %vm716_vm1, %v3518_v11  ;;  %v2095_v11 = vld [vmem:[#allocation3 + $0x60] sm:$0xff]  ;;  %v2096_v12 = vld [vmem:[#allocation3 + $0x68] sm:$0xff] }
  0xa4   : > { %3425 = vmatprep.subr.msk.bf16.mxu0 %vm716_vm1, %v1385_v13  ;;  %3104 = vmatprep.mubr.msk.bf16.mxu1 %vm716_vm1, %v3520_v17  ;;  %v2111_v17 = vld [vmem:[#allocation3 + $0xe0] sm:$0xff] }
  0xa5   : > { %3437 = vmatprep.subr.msk.bf16.mxu1 %vm716_vm1, %v3895_v41  ;;  %2247 = vperm.xlu0 %3488, %v2109_v36   ;;  %v3542_v13 = vld [vmem:[%s4733_s2 + $0x1a8] sm:$0xff]  }
  0xa6   : > { %2252 = vperm.xlu1 %3489, %v2110_v7  }
  0xa9   : > { %3105 = vmatmul.mubr.msk.bf16.gmra.mrb[16].mxu1 %vm716_vm1, %v3521_v18  ;;  %2177 = vperm.xlu0 %3488, %v2095_v11   ;;  %v2097_v18 = vld [vmem:[#allocation3 + $0x70] sm:$0xff] }
  0xaa   : > { %3157 = vmatmul.mubr.msk.bf16.gmra.mrb[20].mxu0 %vm716_vm1, %v3519_v43  ;;  %3304 = vmatpush3.bf16.xpose.msra.mxu1 %v4077_v22  ;;  %v2113_v43 = vld [vmem:[#allocation3 + $0xf0] sm:$0xff] }
  0xab   : > { %3179 = vmatpush3.bf16.xpose.msra.mxu0 %v1454_v24  ;;  %3160 = vmatprep.mubr.msk.bf16.mxu0 %vm716_vm1, %v3522_v23  ;;  %v2114_v23 = vld [vmem:[#allocation3 + $0xf8] sm:$0xff] }
  0xac   : > { %3426 = vmatprep.subr.msk.bf16.mxu0 %vm716_vm1, %v1387_v38  ;;  %3108 = vmatprep.mubr.msk.bf16.mxu1 %vm716_vm1, %v3524_v32  ;;  %v3544_v24 = vld [vmem:[%s4733_s2 + $0x138] sm:$0xff]   ;;  %v3547_v32 = vld [vmem:[%s4733_s2 + $0x140] sm:$0xff]   ;;  %v3548_v38 = vld [vmem:[%s4733_s2 + $0x148] sm:$0xff]  }
  0xad   : > { %3439 = vmatprep.subr.msk.bf16.mxu1 %vm716_vm1, %v3904_v52  ;;  %2182 = vperm.xlu1 %3489, %v2096_v12  }
  0xae   : > { %2257 = vperm.xlu0 %3488, %v2111_v17  }
  0xb1   : > { %3109 = vmatmul.mubr.msk.bf16.gmra.mrb[20].mxu1 %vm716_vm1, %v3525_v27  ;;  %2262 = vperm.xlu1 %3489, %v2112_v14   ;;  %v3556_v27 = vld [vmem:[%s4733_s2 + $0x168] sm:$0xff]  }
  0xb2   : > { %3161 = vmatmul.mubr.msk.bf16.gmra.mrb[24].mxu0 %vm716_vm1, %v3523_v31  ;;  %3305 = vmatpush3.bf16.xpose.msra.mxu1 %v4104_v47  ;;  %v3559_v31 = vld [vmem:[%s4733_s2 + $0x170] sm:$0xff]  }
  0xb3   : > { %3181 = vmatpush3.bf16.xpose.msra.mxu0 %v1457_v42  ;;  %3164 = vmatprep.mubr.msk.bf16.mxu0 %vm716_vm1, %v3526_v40 }
  0xb4   : > { %3427 = vmatprep.subr.msk.bf16.mxu0 %vm716_vm1, %v1389_v45  ;;  %3112 = vmatprep.mubr.msk.bf16.mxu1 %vm716_vm1, %v3528_v55  ;;  %v4740_v45 = vmov 0.0  }
  0xb5   : > { %3441 = vmatprep.subr.msk.bf16.mxu1 %vm716_vm1, %v3915_v60  ;;  %2187 = vperm.xlu0 %3488, %v2097_v18  }
  0xb6   : > { %2192 = vperm.xlu1 %3489, %v2098_v19  }
  0xb9   : > { %3113 = vmatmul.mubr.msk.bf16.gmra.mrb[24].mxu1 %vm716_vm1, %v3529_v51  ;;  %2267 = vperm.xlu0 %3488, %v2113_v43  }
  0xba   : > { %3165 = vmatmul.mubr.msk.bf16.gmra.mrb[28].mxu0 %vm716_vm1, %v3527_v53  ;;  %3306 = vmatpush3.bf16.xpose.msra.mxu1 %v4130_v56 }
  0xbb   : > { %3183 = vmatpush3.bf16.xpose.msra.mxu0 %v1460_v59  ;;  %3184 = vmatprep.mubr.msk.bf16.mxu0 %vm716_vm1, %v3530_v58 }
  0xbc   : > { %3428 = vmatprep.subr.msk.bf16.mxu0 %vm716_vm1, %v3949_v26  ;;  %3116 = vmatprep.mubr.msk.bf16.mxu1 %vm716_vm1, %v3532_v62  ;;  %v3535_v26 = vld [vmem:[%s4733_s2 + $0x110] sm:$0xff]  }
  0xbd   : > { %3443 = vmatprep.subr.msk.bf16.mxu1 %vm716_vm1, %v4144_v63  ;;  %2272 = vperm.xlu1 %3489, %v2114_v23  }
  0xc1   : > { %3117 = vmatmul.mubr.msk.bf16.gmra.mrb[28].mxu1 %vm716_vm1, %v3533_v3 }
  0xc2   : > { %3185 = vmatmul.mubr.msk.bf16.vlgmr.msra.gmra.mrb[0].mxu0 %vm716_vm1, %v3531_v57  ;;  %3307 = vmatpush3.bf16.xpose.msra.mxu1 %v4160_v5 }
  0xc3   : > { %3217 = vmatpush3.bf16.xpose.msra.mxu0 %v3965_v30  ;;  %3188 = vmatprep.mubr.msk.bf16.mxu0 %vm716_vm1, %v3535_v26  ;;  %v3541_v30 = vld [vmem:[%s4733_s2 + $0x1a0] sm:$0xff]  }
  0xc4   : > { %3430 = vmatprep.subr.msk.bf16.mxu0 %vm716_vm1, %v3980_v37  ;;  %3236 = vmatprep.mubr.msk.bf16.mxu1 %vm716_vm1, %v3537_v6  ;;  %v3539_v37 = vld [vmem:[%s4733_s2 + $0x120] sm:$0xff]  }
  0xc5   : > { %3264 = vmatprep.subr.bf16.mxu1 %v4740_v45 }
  0xc9   : > { %3237 = vmatmul.mubr.msk.bf16.vlgmr.msra.gmra.mrb[32].mxu1 %vm716_vm1, %v3538_v8 }
  0xca   : > { %3189 = vmatmul.mubr.msk.bf16.gmra.mrb[4].mxu0 %vm716_vm1, %v3536_v9  ;;  %3240 = vmatprep.mubr.msk.bf16.mxu1 %vm716_vm1, %v3541_v30 }
  0xcb   : > { %3219 = vmatpush3.bf16.xpose.msra.mxu0 %v3996_v49  ;;  %3192 = vmatprep.mubr.msk.bf16.mxu0 %vm716_vm1, %v3539_v37  ;;  %v3545_v49 = vld [vmem:[%s4733_s2 + $0x1b0] sm:$0xff]  }
  0xcc   : > { %3432 = vmatprep.subr.msk.bf16.mxu0 %vm716_vm1, %v3877_v20  ;;  %v3543_v20 = vld [vmem:[%s4733_s2 + $0x130] sm:$0xff]  }
  0xd1   : > { %3241 = vmatmul.mubr.msk.bf16.gmra.mrb[36].mxu1 %vm716_vm1, %v3542_v13 }
  0xd2   : > { %3193 = vmatmul.mubr.msk.bf16.gmra.mrb[8].mxu0 %vm716_vm1, %v3540_v16  ;;  %3244 = vmatprep.mubr.msk.bf16.mxu1 %vm716_vm1, %v3545_v49 }
  0xd3   : > { %3221 = vmatpush3.bf16.xpose.msra.mxu0 %v4024_v1  ;;  %3196 = vmatprep.mubr.msk.bf16.mxu0 %vm716_vm1, %v3543_v20  ;;  %v3549_v1 = vld [vmem:[%s4733_s2 + $0x1c0] sm:$0xff]  }
  0xd4   : > { %3434 = vmatprep.subr.msk.bf16.mxu0 %vm716_vm1, %v3886_v29  ;;  %v3550_v29 = vld [vmem:[%s4733_s2 + $0x1c8] sm:$0xff]   ;;  %v4316_v15 = vpop.permute.xlu0 %2117 }
  0xd5   : > { %4751 = vst [vmem:[#allocation10_spill] sm:$0xff] %v4316_v15  ;;  %v4318_v50 = vpop.permute.xlu1 %2197 }
  0xd8   : > { %v4320_v61 = vpop.permute.xlu0 %2122 }
  0xd9   : > { %3245 = vmatmul.mubr.msk.bf16.gmra.mrb[40].mxu1 %vm716_vm1, %v3546_v21  ;;  %4752 = vst [vmem:[#allocation11_spill] sm:$0xff] %v4320_v61 }
  0xda   : > { %3197 = vmatmul.mubr.msk.bf16.gmra.mrb[12].mxu0 %vm716_vm1, %v3544_v24  ;;  %3248 = vmatprep.mubr.msk.bf16.mxu1 %vm716_vm1, %v3549_v1 }
  0xdb   : > { %3223 = vmatpush3.bf16.xpose.msra.mxu0 %v4050_v10  ;;  %3200 = vmatprep.mubr.msk.bf16.mxu0 %vm716_vm1, %v3547_v32  ;;  %v3551_v10 = vld [vmem:[%s4733_s2 + $0x150] sm:$0xff]  }
  0xdc   : > { %3436 = vmatprep.subr.msk.bf16.mxu0 %vm716_vm1, %v3895_v41  ;;  %v3554_v41 = vld [vmem:[%s4733_s2 + $0x1d8] sm:$0xff]  }
  0xe1   : > { %3249 = vmatmul.mubr.msk.bf16.gmra.mrb[44].mxu1 %vm716_vm1, %v3550_v29 }
  0xe2   : > { %3201 = vmatmul.mubr.msk.bf16.gmra.mrb[16].mxu0 %vm716_vm1, %v3548_v38  ;;  %3252 = vmatprep.mubr.msk.bf16.mxu1 %vm716_vm1, %v3553_v44 }
  0xe3   : > { %3225 = vmatpush3.bf16.xpose.msra.mxu0 %v4077_v22  ;;  %3204 = vmatprep.mubr.msk.bf16.mxu0 %vm716_vm1, %v3551_v10  ;;  %v3555_v22 = vld [vmem:[%s4733_s2 + $0x160] sm:$0xff]  }
  0xe4   : > { %3438 = vmatprep.subr.msk.bf16.mxu0 %vm716_vm1, %v3904_v52  ;;  %v3558_v52 = vld [vmem:[%s4733_s2 + $0x1e8] sm:$0xff]  }
  0xe9   : > { %3253 = vmatmul.mubr.msk.bf16.gmra.mrb[48].mxu1 %vm716_vm1, %v3554_v41 }
  0xea   : > { %3205 = vmatmul.mubr.msk.bf16.gmra.mrb[20].mxu0 %vm716_vm1, %v3552_v25  ;;  %3256 = vmatprep.mubr.msk.bf16.mxu1 %vm716_vm1, %v3557_v39 }
  0xeb   : > { %3227 = vmatpush3.bf16.xpose.msra.mxu0 %v4104_v47  ;;  %3208 = vmatprep.mubr.msk.bf16.mxu0 %vm716_vm1, %v3555_v22  ;;  %v4322_v54 = vpop.permute.xlu1 %2202 }
  0xec   : > { %3440 = vmatprep.subr.msk.bf16.mxu0 %vm716_vm1, %v3915_v60  ;;  %v3562_v60 = vld [vmem:[%s4733_s2 + $0x1f8] sm:$0xff]  }
  0xef   : > { %v4334_v0 = vpop.permute.xlu1 %2132 }
  0xf0   : > { %4754 = vst [vmem:[#allocation13_spill] sm:$0xff] %v4334_v0 }
  0xf1   : > { %3257 = vmatmul.mubr.msk.bf16.gmra.mrb[52].mxu1 %vm716_vm1, %v3558_v52 }
  0xf2   : > { %3209 = vmatmul.mubr.msk.bf16.gmra.mrb[24].mxu0 %vm716_vm1, %v3556_v27  ;;  %3260 = vmatprep.mubr.msk.bf16.mxu1 %vm716_vm1, %v3561_v28 }
  0xf3   : > { %3229 = vmatpush3.bf16.xpose.msra.mxu0 %v4130_v56  ;;  %3212 = vmatprep.mubr.msk.bf16.mxu0 %vm716_vm1, %v3559_v31 }
  0xf4   : > { %3442 = vmatprep.subr.msk.bf16.mxu0 %vm716_vm1, %v4144_v63  ;;  %v4332_v63 = vpop.permute.xlu0 %2127  ;;  %v4346_v26 = vpop.permute.xlu1 %2212 }
  0xf5   : > { %4753 = vst [vmem:[#allocation12_spill] sm:$0xff] %v4332_v63 }
  0xf8   : > { %v4342_v4 = vpop.permute.xlu0 %2207  ;;  %v4354_v8 = vpop.permute.xlu1 %2142 }
  0xf9   : > { %3261 = vmatmul.mubr.msk.bf16.gmra.mrb[56].mxu1 %vm716_vm1, %v3562_v60 }
  0xfa   : > { %3213 = vmatmul.mubr.msk.bf16.gmra.mrb[28].mxu0 %vm716_vm1, %v3560_v33  ;;  %3280 = vmatprep.mubr.msk.bf16.mxu1 %vm3671_vm5, %v4740_v45 }
  0xfb   : > { %3231 = vmatpush3.bf16.xpose.msra.mxu0 %v4160_v5  ;;  %3232 = vmatprep.mubr.msk.bf16.mxu0 %vm716_vm1, %v3563_v34 }
  0xfc   : > { %v4350_v36 = vpop.permute.xlu0 %2137  ;;  %v4362_v37 = vpop.permute.xlu1 %2222 }
 0x100   : > { %v4360_v11 = vpop.permute.xlu0 %2217 }
 0x102   : > { %3233 = vmatmul.mubr.msk.bf16.vlgmr.msra.gmra.mrb[0].mxu0 %vm716_vm1, %v3564_v35 }
 0x104   : > { %v4372_v16 = vpop.permute.xlu0 %2147  ;;  %v4374_v49 = vpop.permute.xlu1 %2152 }
 0x108   : > { %v4388_v23 = vpop.permute.xlu1 %2232 }
 0x10c   : > { %v4382_v43 = vpop.permute.xlu0 %2227 }
 0x110   : > { %v4392_v1 = vpop.permute.xlu0 %2157 }
 0x114   : > { %v4396_v29 = vpop.permute.xlu1 %2162 }
 0x115   : > { %v4402_v10 = vpop.permute.xlu0 %2237 }
 0x11c   : > { %v4404_v41 = vpop.permute.xlu1 %2242 }
 0x11d   : > { %v4408_v15 = vpop.permute.xlu0 %2167 }
 0x120   : > { %v4410_v63 = vpop.permute.xlu1 %2172 }
 0x15c   : > { %v4307_v47 = vpop.f32.mrb[0].mxu1 }
 0x15d   : > { %4747 = vst [vmem:[#allocation6_spill] sm:$0xff] %v4307_v47  ;;  %v4309_v40 = vpop.f32.mrb[1].mxu1 }
 0x15e   : > { %4748 = vst [vmem:[#allocation7_spill] sm:$0xff] %v4309_v40  ;;  %v4311_v42 = vpop.f32.mrb[2].mxu1 }
 0x15f   : > { %4749 = vst [vmem:[#allocation8_spill] sm:$0xff] %v4311_v42  ;;  %v4313_v55 = vpop.f32.mrb[3].mxu1 }
 0x160   : > { %4750 = vst [vmem:[#allocation9_spill] sm:$0xff] %v4313_v55 }
 0x164   : > { %v3094_v46 = vpop.f32.mrb[4].mxu1 }
 0x165   : > { %v839_v48 = vpop.f32.mrb[5].mxu1 }
 0x166   : > { %v3095_v51 = vpop.f32.mrb[6].mxu1 }
 0x167   : > { %v842_v53 = vpop.f32.mrb[7].mxu1 }
 0x16c   : > { %v4324_v56 = vpop.f32.mrb[8].mxu1 }
 0x16d   : > { %v4326_v58 = vpop.f32.mrb[9].mxu1 }
 0x16e   : > { %v4328_v59 = vpop.f32.mrb[10].mxu1 }
 0x16f   : > { %v4330_v62 = vpop.f32.mrb[11].mxu1 }
 0x174   : > { %v4336_v2 = vpop.f32.mrb[12].mxu1 }
 0x175   : > { %v4338_v3 = vpop.f32.mrb[13].mxu1 }
 0x176   : > { %v4340_v57 = vpop.f32.mrb[14].mxu1 }
 0x177   : > { %v4344_v5 = vpop.f32.mrb[15].mxu1 }
 0x17c   : > { %v4348_v6 = vpop.f32.mrb[16].mxu1 }
 0x17d   : > { %v4352_v7 = vpop.f32.mrb[17].mxu1 }
 0x17e   : > { %v4356_v9 = vpop.f32.mrb[18].mxu1 }
 0x17f   : > { %v4358_v30 = vpop.f32.mrb[19].mxu1 }
 0x184   : > { %v4364_v12 = vpop.f32.mrb[20].mxu1 }
 0x185   : > { %v4366_v17 = vpop.f32.mrb[21].mxu1 }
 0x186   : > { %v4368_v13 = vpop.f32.mrb[22].mxu1 }
 0x187   : > { %v4370_v14 = vpop.f32.mrb[23].mxu1 }
 0x18c   : > { %v4376_v18 = vpop.f32.mrb[24].mxu1 }
 0x18d   : > { %v4378_v20 = vpop.f32.mrb[25].mxu1 }
 0x18e   : > { %v4380_v19 = vpop.f32.mrb[26].mxu1 }
 0x18f   : > { %v4384_v21 = vpop.f32.mrb[27].mxu1 }
 0x194   : > { %v4390_v24 = vpop.f32.mrb[28].mxu1 }
 0x195   : > { %4755 = vst [vmem:[#allocation14_spill] sm:$0xff] %v4390_v24  ;;  %v4394_v32 = vpop.f32.mrb[29].mxu1 }
 0x196   : > { %4756 = vst [vmem:[#allocation15_spill] sm:$0xff] %v4394_v32  ;;  %v4398_v38 = vpop.f32.mrb[30].mxu1 }
 0x197   : > { %4757 = vst [vmem:[#allocation16_spill] sm:$0xff] %v4398_v38  ;;  %v4400_v44 = vpop.f32.mrb[31].mxu1 }
 0x198   : > { %4758 = vst [vmem:[#allocation17_spill] sm:$0xff] %v4400_v44 }
 0x19c   : > { %v3238_v25 = vpop.f32.mrb[32].mxu1 }
 0x19d   : > { %v3190_v39 = vpop.f32.mrb[4].mxu0  ;;  %v1940_v22 = vpop.f32.mrb[33].mxu1 }
 0x19e   : > { %v3312_v52 = vadd.f32 %v3190_v39, %v3094_v46  ;;  %v1512_v27 = vpop.f32.mrb[5].mxu0  ;;  %v3239_v28 = vpop.f32.mrb[34].mxu1 }
 0x19f   : > { %v3314_v31 = vadd.f32 %v1512_v27, %v839_v48  ;;  %v3191_v60 = vpop.f32.mrb[6].mxu0  ;;  %v1943_v33 = vpop.f32.mrb[35].mxu1 }
 0x1a0   : > { %v3316_v34 = vadd.f32 %v3191_v60, %v3095_v51  ;;  %v3313_v35 = vadd.f32 %v3312_v52, %v3238_v25  ;;  %v1515_v45 = vpop.f32.mrb[7].mxu0  ;;  %v4416_v60 = vpop.permute.xlu0 %2247 }
 0x1a1   : > { %v3318_v61 = vadd.f32 %v1515_v45, %v842_v53  ;;  %v3315_v0 = vadd.f32 %v3314_v31, %v1940_v22 }
 0x1a2   : > { %v4406_v55 = vadd.f32 %v3316_v34, %v3239_v28  ;;  %v4418_v34 = vpop.permute.xlu1 %2252 }
 0x1a3   : > { %v3319_v42 = vadd.f32 %v3318_v61, %v1943_v33 }
 0x1a4   : > { %v3242_v40 = vpop.f32.mrb[36].mxu1 }
 0x1a5   : > { %v3194_v47 = vpop.f32.mrb[8].mxu0  ;;  %v1956_v46 = vpop.f32.mrb[37].mxu1 }
 0x1a6   : > { %v3320_v39 = vadd.f32 %v3194_v47, %v4324_v56  ;;  %v1528_v48 = vpop.f32.mrb[9].mxu0  ;;  %v3243_v27 = vpop.f32.mrb[38].mxu1 }
 0x1a7   : > { %v3322_v51 = vadd.f32 %v1528_v48, %v4326_v58  ;;  %v3195_v25 = vpop.f32.mrb[10].mxu0  ;;  %v1959_v52 = vpop.f32.mrb[39].mxu1 }
 0x1a8   : > { %v3324_v45 = vadd.f32 %v3195_v25, %v4328_v59  ;;  %v3321_v53 = vadd.f32 %v3320_v39, %v3242_v40  ;;  %v1531_v22 = vpop.f32.mrb[11].mxu0 }
 0x1a9   : > { %v3326_v28 = vadd.f32 %v1531_v22, %v4330_v62  ;;  %v3323_v61 = vadd.f32 %v3322_v51, %v1956_v46 }
 0x1aa   : > { %v3325_v31 = vadd.f32 %v3324_v45, %v3243_v27  ;;  %v2178_v45 = vpop.permute.xlu0 %2177 }
 0x1ab   : > { %v3327_v33 = vadd.f32 %v3326_v28, %v1959_v52  ;;  %v4428_v28 = vpop.permute.xlu1 %2182 }
 0x1ac   : > { %v3246_v47 = vpop.f32.mrb[40].mxu1 }
 0x1ad   : > { %v3198_v56 = vpop.f32.mrb[12].mxu0  ;;  %v1972_v44 = vpop.f32.mrb[41].mxu1 }
 0x1ae   : > { %v3328_v58 = vadd.f32 %v3198_v56, %v4336_v2  ;;  %v1544_v48 = vpop.f32.mrb[13].mxu0  ;;  %v3247_v38 = vpop.f32.mrb[42].mxu1 }
 0x1af   : > { %v3330_v59 = vadd.f32 %v1544_v48, %v4338_v3  ;;  %v3199_v40 = vpop.f32.mrb[14].mxu0  ;;  %v1975_v39 = vpop.f32.mrb[43].mxu1 }
 0x1b0   : > { %v3332_v62 = vadd.f32 %v3199_v40, %v4340_v57  ;;  %v3329_v46 = vadd.f32 %v3328_v58, %v3246_v47  ;;  %v1547_v27 = vpop.f32.mrb[15].mxu0 }
 0x1b1   : > { %v3334_v51 = vadd.f32 %v1547_v27, %v4344_v5  ;;  %v3331_v25 = vadd.f32 %v3330_v59, %v1972_v44 }
 0x1b2   : > { %v4424_v52 = vadd.f32 %v3332_v62, %v3247_v38 }
 0x1b3   : > { %v4426_v22 = vadd.f32 %v3334_v51, %v1975_v39  ;;  %v4438_v39 = vpop.permute.xlu0 %2257  ;;  %v4446_v51 = vpop.permute.xlu1 %2262 }
 0x1b4   : > { %v3250_v2 = vpop.f32.mrb[44].mxu1 }
 0x1b5   : > { %v3202_v56 = vpop.f32.mrb[16].mxu0  ;;  %v1988_v32 = vpop.f32.mrb[45].mxu1 }
 0x1b6   : > { %v3336_v3 = vadd.f32 %v3202_v56, %v4348_v6  ;;  %v1560_v48 = vpop.f32.mrb[17].mxu0  ;;  %v3251_v24 = vpop.f32.mrb[46].mxu1  ;;  %v2281_v6 = vadd.f32 %v3313_v35, %v4372_v16  ;;  %v2285_v16 = vadd.f32 %v3321_v53, %v4408_v15 }
 0x1b7   : > { %v3338_v57 = vadd.f32 %v1560_v48, %v4352_v7  ;;  %v3203_v47 = vpop.f32.mrb[18].mxu0  ;;  %v1991_v58 = vpop.f32.mrb[47].mxu1  ;;  %v2279_v7 = vadd.f32 %v3315_v0, %v4350_v36 }
 0x1b8   : > { %v3340_v5 = vadd.f32 %v3203_v47, %v4356_v9  ;;  %v4433_v38 = vadd.f32 %v3336_v3, %v3250_v2  ;;  %v1563_v44 = vpop.f32.mrb[19].mxu0 }
 0x1b9   : > { %v3342_v59 = vadd.f32 %v1563_v44, %v4358_v30  ;;  %v4436_v40 = vadd.f32 %v3338_v57, %v1988_v32  ;;  %v2282_v30 = vadd.f32 %v4406_v55, %v4374_v49  ;;  %v2280_v32 = vadd.f32 %v3319_v42, %v4354_v8 }
 0x1ba   : > { %v4440_v62 = vadd.f32 %v3340_v5, %v3251_v24  ;;  %v2313_v57 = vmul.f32 %v2281_v6, %v2281_v6  ;;  %v2311_v47 = vmul.f32 %v2279_v7, %v2279_v7  ;;  %v2188_v5 = vpop.permute.xlu0 %2187  ;;  %v2286_v42 = vadd.f32 %v3325_v31, %v4410_v63 }
 0x1bb   : > { %v4443_v27 = vadd.f32 %v3342_v59, %v1991_v58  ;;  %v2283_v58 = vadd.f32 %v3323_v61, %v4392_v1  ;;  %v2284_v8 = vadd.f32 %v3327_v33, %v4396_v29  ;;  %v2314_v15 = vmul.f32 %v2282_v30, %v2282_v30  ;;  %v2193_v1 = vpop.permute.xlu1 %2192 }
 0x1bc   : > { %v3254_v9 = vpop.f32.mrb[48].mxu1  ;;  %v2312_v53 = vmul.f32 %v2280_v32, %v2280_v32  ;;  %v2317_v7 = vmul.f32 %v2285_v16, %v2285_v16  ;;  %v2318_v31 = vmul.f32 %v2286_v42, %v2286_v42 }
 0x1bd   : > { %v3206_v2 = vpop.f32.mrb[20].mxu0  ;;  %v2004_v56 = vpop.f32.mrb[49].mxu1 }
 0x1be   : > { %v3344_v3 = vadd.f32 %v3206_v2, %v4364_v12  ;;  %v1576_v24 = vpop.f32.mrb[21].mxu0  ;;  %v3255_v48 = vpop.f32.mrb[50].mxu1  ;;  %v2289_v2 = vadd.f32 %v3329_v46, %v2188_v5  ;;  %v2290_v46 = vadd.f32 %v4424_v52, %v2193_v1 }
 0x1bf   : > { %v3346_v35 = vadd.f32 %v1576_v24, %v4366_v17  ;;  %v3207_v0 = vpop.f32.mrb[22].mxu0  ;;  %v2007_v36 = vpop.f32.mrb[51].mxu1 }
 0x1c0   : > { %v3348_v44 = vadd.f32 %v3207_v0, %v4368_v13  ;;  %v3345_v55 = vadd.f32 %v3344_v3, %v3254_v9  ;;  %v1579_v49 = vpop.f32.mrb[23].mxu0  ;;  %v2315_v9 = vmul.f32 %v2283_v58, %v2283_v58  ;;  %v2287_v3 = vadd.f32 %v3331_v25, %v2178_v45 }
 0x1c1   : > { %v3350_v12 = vadd.f32 %v1579_v49, %v4370_v14  ;;  %v3347_v59 = vadd.f32 %v3346_v35, %v2004_v56  ;;  %v4462_v14 = vmul.f32 %v2284_v8, %v2284_v8  ;;  %v4469_v16 = vmul.f32 %v2289_v2, %v2289_v2 }
 0x1c2   : > { %v2297_v17 = vadd.f32 %v3345_v55, %v4382_v43  ;;  %v3349_v6 = vadd.f32 %v3348_v44, %v3255_v48  ;;  %v4474_v58 = vmul.f32 %v2287_v3, %v2287_v3  ;;  %v4484_v42 = vmul.f32 %v2290_v46, %v2290_v46  ;;  %v4762_v46 = vld [vmem:[#allocation17_spill] sm:$0xff] }
 0x1c3   : > { %v2295_v61 = vadd.f32 %v3347_v59, %v4360_v11  ;;  %v3351_v13 = vadd.f32 %v3350_v12, %v2007_v36 }
 0x1c4   : > { %v2329_v24 = vmul.f32 %v2297_v17, %v2297_v17  ;;  %v2298_v63 = vadd.f32 %v3349_v6, %v4388_v23  ;;  %v3258_v29 = vpop.f32.mrb[52].mxu1 }
 0x1c5   : > { %v2327_v33 = vmul.f32 %v2295_v61, %v2295_v61  ;;  %v2296_v56 = vadd.f32 %v3351_v13, %v4362_v37  ;;  %v3210_v43 = vpop.f32.mrb[24].mxu0  ;;  %v2020_v30 = vpop.f32.mrb[53].mxu1 }
 0x1c6   : > { %v4466_v32 = vadd.f32 %v2329_v24, %v2313_v57  ;;  %v2330_v11 = vmul.f32 %v2298_v63, %v2298_v63  ;;  %v3352_v48 = vadd.f32 %v3210_v43, %v4376_v18  ;;  %v1592_v25 = vpop.f32.mrb[25].mxu0  ;;  %v3259_v45 = vpop.f32.mrb[54].mxu1  ;;  %v2288_v18 = vadd.f32 %v4426_v22, %v4428_v28  ;;  %v4761_v63 = vld [vmem:[#allocation16_spill] sm:$0xff] }
 0x1c7   : > { %v4471_v23 = vadd.f32 %v2327_v33, %v2311_v47  ;;  %v2328_v35 = vmul.f32 %v2296_v56, %v2296_v56  ;;  %v3354_v0 = vadd.f32 %v1592_v25, %v4378_v20  ;;  %v3211_v36 = vpop.f32.mrb[26].mxu0  ;;  %v2023_v37 = vpop.f32.mrb[55].mxu1  ;;  %v2293_v20 = vadd.f32 %v4433_v38, %v4342_v4 }
 0x1c8   : > { %v4476_v5 = vadd.f32 %v2330_v11, %v2314_v15  ;;  %v3356_v52 = vadd.f32 %v3211_v36, %v4380_v19  ;;  %v3353_v57 = vadd.f32 %v3352_v48, %v3258_v29  ;;  %v1595_v44 = vpop.f32.mrb[27].mxu0  ;;  %v2291_v19 = vadd.f32 %v4436_v40, %v4318_v50 }
 0x1c9   : > { %v4481_v55 = vadd.f32 %v2328_v35, %v2312_v53  ;;  %v3358_v47 = vadd.f32 %v1595_v44, %v4384_v21  ;;  %v3355_v49 = vadd.f32 %v3354_v0, %v2020_v30  ;;  %3568 = vrsqrt.f32 %v4466_v32  ;;  %v2268_v30 = vpop.permute.xlu0 %2267  ;;  %v2273_v0 = vpop.permute.xlu1 %2272 }
 0x1ca   : > { %v2301_v8 = vadd.f32 %v3353_v57, %v4416_v60  ;;  %v3357_v12 = vadd.f32 %v3356_v52, %v3259_v45  ;;  %v2294_v21 = vadd.f32 %v4440_v62, %v4346_v26  ;;  %3570 = vrsqrt.f32 %v4471_v23  ;;  %v4759_v62 = vld [vmem:[#allocation14_spill] sm:$0xff] }
 0x1cb   : > { %v2299_v22 = vadd.f32 %v3355_v49, %v4402_v10  ;;  %v3359_v28 = vadd.f32 %v3358_v47, %v2023_v37  ;;  %v2292_v60 = vadd.f32 %v4443_v27, %v4322_v54  ;;  %3572 = vrsqrt.f32 %v4481_v55  ;;  %v4760_v27 = vld [vmem:[#allocation15_spill] sm:$0xff] }
 0x1cc   : > { %v2333_v59 = vmul.f32 %v2301_v8, %v2301_v8  ;;  %v2302_v15 = vadd.f32 %v3357_v12, %v4418_v34  ;;  %v3262_v4 = vpop.f32.mrb[56].mxu1  ;;  %3574 = vrsqrt.f32 %v4476_v5  ;;  %v2320_v2 = vmul.f32 %v2288_v18, %v2288_v18  ;;  %v4763_v12 = vld [vmem:[#allocation6_spill] sm:$0xff] }
 0x1cd   : > { %v2331_v50 = vmul.f32 %v2299_v22, %v2299_v22  ;;  %v2300_v38 = vadd.f32 %v3359_v28, %v4404_v41  ;;  %v3214_v40 = vpop.f32.mrb[28].mxu0  ;;  %v2036_v10 = vpop.f32.mrb[57].mxu1  ;;  %v2325_v41 = vmul.f32 %v2293_v20, %v2293_v20  ;;  %v2323_v56 = vmul.f32 %v2291_v19, %v2291_v19 }
 0x1ce   : > { %v4502_v53 = vadd.f32 %v2333_v59, %v2317_v7  ;;  %v2334_v26 = vmul.f32 %v2302_v15, %v2302_v15  ;;  %v3360_v17 = vadd.f32 %v3214_v40, %v4759_v62  ;;  %v1608_v6 = vpop.f32.mrb[29].mxu0  ;;  %v3263_v34 = vpop.f32.mrb[58].mxu1  ;;  %v2326_v48 = vmul.f32 %v2294_v21, %v2294_v21  ;;  %v4764_v59 = vld [vmem:[#allocation7_spill] sm:$0xff]  ;;  %v4766_v40 = vld [vmem:[#allocation8_spill] sm:$0xff] }
 0x1cf   : > { %v4505_v1 = vadd.f32 %v2331_v50, %v2315_v9  ;;  %v2332_v54 = vmul.f32 %v2300_v38, %v2300_v38  ;;  %v3362_v61 = vadd.f32 %v1608_v6, %v4760_v27  ;;  %v3215_v13 = vpop.f32.mrb[30].mxu0  ;;  %v2039_v3 = vpop.f32.mrb[59].mxu1  ;;  %v4515_v25 = vmul.f32 %v2292_v60, %v2292_v60  ;;  %v4765_v50 = vld [vmem:[#allocation12_spill] sm:$0xff] }
 0x1d0   : > { %v4508_v24 = vadd.f32 %v2334_v26, %v2318_v31  ;;  %v3364_v29 = vadd.f32 %v3215_v13, %v4761_v63  ;;  %v3361_v7 = vadd.f32 %v3360_v17, %v3262_v4  ;;  %v1611_v33 = vpop.f32.mrb[31].mxu0  ;;  %v2388_v37 = vand.u32 2147483648, %v4471_v23 }
 0x1d1   : > { %v4512_v43 = vadd.f32 %v2332_v54, %v4462_v14  ;;  %v3366_v9 = vadd.f32 %v1611_v33, %v4762_v46  ;;  %v3363_v11 = vadd.f32 %v3362_v61, %v2036_v10  ;;  %vm2392_vm6 = vcmp.eq.f32.partialorder %v4481_v55, inf }
 0x1d2   : > { %v2305_v45 = vadd.f32 %v3361_v7, %v2268_v30  ;;  %v3365_v35 = vadd.f32 %v3364_v29, %v3263_v34  ;;  %3576 = vrsqrt.f32 %v4502_v53  ;;  %vm2385_vm7 = vcmp.eq.f32.partialorder %v4471_v23, inf  ;;  %v4768_v34 = vld [vmem:[#allocation9_spill] sm:$0xff]  ;;  %v4770_v29 = vld [vmem:[#allocation11_spill] sm:$0xff] }
 0x1d3   : > { %v2303_v31 = vadd.f32 %v3363_v11, %v4438_v39  ;;  %v3367_v36 = vadd.f32 %v3366_v9, %v2039_v3  ;;  %v2395_v57 = vand.u32 2147483648, %v4481_v55  ;;  %v3569_v44 = vpop.eup %3568  ;;  %3578 = vrsqrt.f32 %v4505_v1 }
 0x1d4   : > { %v2337_v14 = vmul.f32 %v2305_v45, %v2305_v45  ;;  %v2306_v52 = vadd.f32 %v3365_v35, %v2273_v0  ;;  %vm2399_vm8 = vcmp.eq.f32.partialorder %v4466_v32, inf  ;;  %v3571_v49 = vpop.eup %3570  ;;  %3580 = vrsqrt.f32 %v4508_v24 }
 0x1d5   : > { %v2335_v18 = vmul.f32 %v2303_v31, %v2303_v31  ;;  %v2304_v47 = vadd.f32 %v3367_v36, %v4446_v51  ;;  %v3234_v39 = vpop.f32.mrb[0].mxu0  ;;  %v3573_v28 = vpop.eup %3572  ;;  %3582 = vrsqrt.f32 %v4512_v43  ;;  %vm2387_vm9 = vcmp.eq.f32.partialorder %v4471_v23, 0.0 }
 0x1d6   : > { %v4528_v20 = vadd.f32 %v2337_v14, %v4469_v16  ;;  %v2338_v8 = vmul.f32 %v2306_v52, %v2306_v52  ;;  %v3308_v19 = vadd.f32 %v3234_v39, %v4763_v12  ;;  %v1924_v22 = vpop.f32.mrb[1].mxu0  ;;  %v3575_v60 = vpop.eup %3574  ;;  %v2398_v62 = vmul.f32 %v3569_v44, %v4466_v32 }
 0x1d7   : > { %v4533_v21 = vadd.f32 %v2335_v18, %v4474_v58  ;;  %v2336_v51 = vmul.f32 %v2304_v47, %v2304_v47  ;;  %v3309_v15 = vadd.f32 %v1924_v22, %v4764_v59  ;;  %v3235_v4 = vpop.f32.mrb[2].mxu0  ;;  %v4767_v58 = vld [vmem:[#allocation10_spill] sm:$0xff]  ;;  %v2384_v27 = vmul.f32 %v3571_v49, %v4471_v23 }
 0x1d8   : > { %v4538_v16 = vadd.f32 %v2338_v8, %v4484_v42  ;;  %v2277_v38 = vadd.f32 %v3308_v19, %v4765_v50  ;;  %v3310_v10 = vadd.f32 %v3235_v4, %v4766_v40  ;;  %v1927_v26 = vpop.f32.mrb[3].mxu0  ;;  %3584 = vrsqrt.f32 %v4528_v20  ;;  %v4769_v42 = vld [vmem:[#allocation13_spill] sm:$0xff] }
 0x1d9   : > { %v4543_v17 = vadd.f32 %v2336_v51, %v2320_v2  ;;  %v2275_v6 = vadd.f32 %v3309_v15, %v4767_v58  ;;  %v3311_v54 = vadd.f32 %v1927_v26, %v4768_v34  ;;  %v2391_v3 = vmul.f32 %v3573_v28, %v4481_v55 }
 0x1da   : > { %v2309_v61 = vmul.f32 %v2277_v38, %v2277_v38  ;;  %v2278_v13 = vadd.f32 %v3310_v10, %v4769_v42  ;;  %3586 = vrsqrt.f32 %v4533_v21  ;;  %v2405_v2 = vmul.f32 %v3575_v60, %v4476_v5 }
 0x1db   : > { %v2307_v63 = vmul.f32 %v2275_v6, %v2275_v6  ;;  %v2276_v7 = vadd.f32 %v3311_v54, %v4770_v29  ;;  %3588 = vrsqrt.f32 %v4538_v16  ;;  %v2393_v46 = vsel %vm2392_vm6, %v4481_v55, %v2391_v3 }
 0x1dc   : > { %v4555_v33 = vadd.f32 %v2325_v41, %v2309_v61  ;;  %v2310_v30 = vmul.f32 %v2278_v13, %v2278_v13  ;;  %3590 = vrsqrt.f32 %v4543_v17  ;;  %v2386_v45 = vsel %vm2385_vm7, %v4471_v23, %v2384_v27  ;;  %v3577_v35 = vpop.eup %3576 }
 0x1dd   : > { %v4561_v9 = vadd.f32 %v2323_v56, %v2307_v63  ;;  %v2308_v11 = vmul.f32 %v2276_v7, %v2276_v7  ;;  %vm2394_vm10 = vcmp.eq.f32.partialorder %v4481_v55, 0.0  ;;  %v2400_v41 = vsel %vm2399_vm8, %v4466_v32, %v2398_v62  ;;  %v3579_v31 = vpop.eup %3578 }
 0x1de   : > { %3592 = vrsqrt.f32 %v4555_v33  ;;  %v4567_v0 = vadd.f32 %v2326_v48, %v2310_v30  ;;  %v4577_v36 = vsel %vm2394_vm10, %v2395_v57, %v2393_v46  ;;  %v2402_v14 = vand.u32 2147483648, %v4466_v32  ;;  %v3581_v52 = vpop.eup %3580 }
 0x1df   : > { %3594 = vrsqrt.f32 %v4561_v9  ;;  %v4575_v56 = vadd.f32 %v4515_v25, %v2308_v11  ;;  %v4585_v55 = vsel %vm2387_vm9, %v2388_v37, %v2386_v45  ;;  %vm2401_vm11 = vcmp.eq.f32.partialorder %v4466_v32, 0.0  ;;  %v3583_v48 = vpop.eup %3582 }
 0x1e0   : > { %3596 = vrsqrt.f32 %v4567_v0  ;;  %vm2406_vm12 = vcmp.eq.f32.partialorder %v4476_v5, inf  ;;  %v4590_v25 = vsel %vm2401_vm11, %v2402_v14, %v2400_v41  ;;  %vm2408_vm13 = vcmp.eq.f32.partialorder %v4476_v5, 0.0 }
 0x1e1   : > { %3598 = vrsqrt.f32 %v4575_v56  ;;  %v2407_v57 = vsel %vm2406_vm12, %v4476_v5, %v2405_v2  ;;  %v2360_v44 = vand.u32 2147483648, %v4561_v9  ;;  %vm2371_vm14 = vcmp.eq.f32.partialorder %v4555_v33, inf }
 0x1e2   : > { %v2374_v23 = vand.u32 2147483648, %v4555_v33  ;;  %v2474_v32 = vpack.c.bf16 %v4577_v36, %v4585_v55  ;;  %v2409_v37 = vand.u32 2147483648, %v4476_v5  ;;  %vm2357_vm15 = vcmp.eq.f32.partialorder %v4561_v9, inf  ;;  %v4605_v39 = vpop.eup %3584  ;;  %v3567_v36 = vld [vmem:[%s4734_s3 + $0x10] ss:$0 sps:$4 sm:$0xff]  }
 0x1e3   : > { %v2367_v18 = vand.u32 2147483648, %v4575_v56  ;;  %v2412_v47 = vmul.f32 %v3579_v31, %v4505_v1  ;;  %vm2413_vm0 = vcmp.eq.f32.partialorder %v4505_v1, inf  ;;  %vm2415_vm1 = vcmp.eq.f32.partialorder %v4505_v1, 0.0 }
 0x1e4   : > { %vm2373_vm2 = vcmp.eq.f32.partialorder %v4555_v33, 0.0  ;;  %vm2378_vm3 = vcmp.eq.f32.partialorder %v4567_v0, inf  ;;  %v4609_v49 = vsel %vm2408_vm13, %v2409_v37, %v2407_v57  ;;  %v2416_v5 = vand.u32 2147483648, %v4505_v1  ;;  %v3587_v12 = vpop.eup %3586 }
 0x1e5   : > { %v2419_v8 = vmul.f32 %v3583_v48, %v4512_v43  ;;  %vm2420_vm4 = vcmp.eq.f32.partialorder %v4512_v43, inf  ;;  %vm2359_vm6 = vcmp.eq.f32.partialorder %v4561_v9, 0.0  ;;  %vm2364_vm7 = vcmp.eq.f32.partialorder %v4575_v56, inf  ;;  %v3589_v59 = vpop.eup %3588 }
 0x1e6   : > { %vm2380_vm8 = vcmp.eq.f32.partialorder %v4567_v0, 0.0  ;;  %v2475_v19 = vpack.c.bf16 %v4609_v49, %v4590_v25  ;;  %v2414_v22 = vsel %vm2413_vm0, %v4505_v1, %v2412_v47  ;;  %v2423_v28 = vand.u32 2147483648, %v4512_v43  ;;  %v3591_v60 = vpop.eup %3590 }
 0x1e7   : > { %v2426_v51 = vmul.f32 %v3577_v35, %v4502_v53  ;;  %vm2366_vm9 = vcmp.eq.f32.partialorder %v4575_v56, 0.0  ;;  %v4625_v15 = vsel %vm2415_vm1, %v2416_v5, %v2414_v22  ;;  %v2421_v4 = vsel %vm2420_vm4, %v4512_v43, %v2419_v8 }
 0x1e8   : > { %vm2422_vm10 = vcmp.eq.f32.partialorder %v4512_v43, 0.0  ;;  %vm2427_vm11 = vcmp.eq.f32.partialorder %v4502_v53, inf  ;;  %vm2429_vm12 = vcmp.eq.f32.partialorder %v4502_v53, 0.0  ;;  %v2433_v40 = vmul.f32 %v3581_v52, %v4508_v24  ;;  %v3593_v10 = vpop.eup %3592 }
 0x1e9   : > { %v4630_v50 = vsel %vm2422_vm10, %v2423_v28, %v2421_v4  ;;  %v2428_v38 = vsel %vm2427_vm11, %v4502_v53, %v2426_v51  ;;  %v2430_v26 = vand.u32 2147483648, %v4502_v53  ;;  %vm2434_vm13 = vcmp.eq.f32.partialorder %v4508_v24, inf  ;;  %v3595_v62 = vpop.eup %3594 }
 0x1ea   : > { %v2476_v1 = vpack.c.bf16 %v4630_v50, %v4625_v15  ;;  %v2437_v43 = vand.u32 2147483648, %v4508_v24  ;;  %v2370_v58 = vmul.f32 %v3593_v10, %v4555_v33  ;;  %v2435_v6 = vsel %vm2434_vm13, %v4508_v24, %v2433_v40  ;;  %v3597_v54 = vpop.eup %3596 }
 0x1eb   : > { %vm2436_vm0 = vcmp.eq.f32.partialorder %v4508_v24, 0.0  ;;  %v2440_v34 = vmul.f32 %v3587_v12, %v4533_v21  ;;  %v2356_v27 = vmul.f32 %v3595_v62, %v4561_v9  ;;  %v2381_v61 = vand.u32 2147483648, %v4567_v0  ;;  %v3599_v13 = vpop.eup %3598 }
 0x1ec   : > { %v2431_v42 = vsel %vm2429_vm12, %v2430_v26, %v2428_v38  ;;  %v2438_v53 = vsel %vm2436_vm0, %v2437_v43, %v2435_v6  ;;  %v2372_v3 = vsel %vm2371_vm14, %v4555_v33, %v2370_v58  ;;  %v2377_v63 = vmul.f32 %v3597_v54, %v4567_v0 }
 0x1ed   : > { %v2477_v29 = vpack.c.bf16 %v2438_v53, %v2431_v42  ;;  %vm2441_vm1 = vcmp.eq.f32.partialorder %v4533_v21, inf  ;;  %v2358_v24 = vsel %vm2357_vm15, %v4561_v9, %v2356_v27  ;;  %v2363_v7 = vmul.f32 %v3599_v13, %v4575_v56 }
 0x1ee   : > { %v2442_v2 = vsel %vm2441_vm1, %v4533_v21, %v2440_v34  ;;  %vm2443_vm4 = vcmp.eq.f32.partialorder %v4533_v21, 0.0  ;;  %v2375_v30 = vsel %vm2373_vm2, %v2374_v23, %v2372_v3  ;;  %v2379_v46 = vsel %vm2378_vm3, %v4567_v0, %v2377_v63 }
 0x1ef   : > { %v2444_v11 = vand.u32 2147483648, %v4533_v21  ;;  %v2447_v45 = vmul.f32 %v3591_v60, %v4543_v17  ;;  %v2361_v35 = vsel %vm2359_vm6, %v2360_v44, %v2358_v24  ;;  %v2365_v41 = vsel %vm2364_vm7, %v4575_v56, %v2363_v7 }
 0x1f0   : > { %v2382_v33 = vsel %vm2380_vm8, %v2381_v61, %v2379_v46  ;;  %vm2448_vm14 = vcmp.eq.f32.partialorder %v4543_v17, inf  ;;  %v2368_v21 = vsel %vm2366_vm9, %v2367_v18, %v2365_v41  ;;  %v2451_v9 = vand.u32 2147483648, %v4543_v17 }
 0x1f1   : > { %v2473_v31 = vpack.c.bf16 %v2382_v33, %v2375_v30  ;;  %v2449_v14 = vsel %vm2448_vm14, %v4543_v17, %v2447_v45  ;;  %v2472_v52 = vpack.c.bf16 %v2368_v21, %v2361_v35  ;;  %v2445_v48 = vsel %vm2443_vm4, %v2444_v11, %v2442_v2 }
 0x1f2   : > { %vm2450_vm15 = vcmp.eq.f32.partialorder %v4543_v17, 0.0  ;;  %v2454_v0 = vmul.f32 %v4605_v39, %v4528_v20  ;;  %vm2455_vm2 = vcmp.eq.f32.partialorder %v4528_v20, inf  ;;  %v2458_v44 = vand.u32 2147483648, %v4528_v20 }
 0x1f3   : > { %v2452_v57 = vsel %vm2450_vm15, %v2451_v9, %v2449_v14  ;;  %v2461_v56 = vmul.f32 %v3589_v59, %v4538_v16  ;;  %3265 = vmatpush3.bf16.msra.mxu1 %v2472_v52  ;;  %vm2462_vm3 = vcmp.eq.f32.partialorder %v4538_v16, inf  ;;  %v2465_v18 = vand.u32 2147483648, %v4538_v16 }
 0x1f4   : > { %v2478_v23 = vpack.c.bf16 %v2452_v57, %v2445_v48  ;;  %v2456_v37 = vsel %vm2455_vm2, %v4528_v20, %v2454_v0  ;;  %v4771_v47 = vmov 0.0   ;;  %vm2457_vm6 = vcmp.eq.f32.partialorder %v4528_v20, 0.0  ;;  %v3565_v20 = vld [vmem:[%s4734_s3] sm:$0xff]  }
 0x1f5   : > { %3266 = vmatprep.subr.bf16.mxu1 %v4771_v47  ;;  %v2463_v17 = vsel %vm2462_vm3, %v4538_v16, %v2461_v56  ;;  %vm2464_vm7 = vcmp.eq.f32.partialorder %v4538_v16, 0.0  ;;  %v2459_v39 = vsel %vm2457_vm6, %v2458_v44, %v2456_v37  ;;  %v3566_v16 = vld [vmem:[%s4734_s3 + $0x8] sm:$0xff]  }
 0x1f6   : > { %v2466_v5 = vsel %vm2464_vm7, %v2465_v18, %v2463_v17 }
 0x1f7   : > { %v2479_v8 = vpack.c.bf16 %v2466_v5, %v2459_v39  ;;  %3267 = vmatpush3.bf16.msra.mxu1 %v2473_v31 }
 0x1f8   : > { %3268 = vmatprep.subr.bf16.mxu1 %v4771_v47 }
 0x1fb   : > { %3269 = vmatpush3.bf16.msra.mxu1 %v2474_v32 }
 0x1fc   : > { %3270 = vmatprep.subr.bf16.mxu1 %v4771_v47 }
 0x1ff   : > { %3271 = vmatpush3.bf16.msra.mxu1 %v2475_v19 }
 0x200   : > { %3272 = vmatprep.subr.bf16.mxu1 %v4771_v47 }
 0x203   : > { %3273 = vmatpush3.bf16.msra.mxu1 %v2476_v1 }
 0x204   : > { %3274 = vmatprep.subr.bf16.mxu1 %v4771_v47 }
 0x207   : > { %3275 = vmatpush3.bf16.msra.mxu1 %v2477_v29 }
 0x208   : > { %3276 = vmatprep.subr.bf16.mxu1 %v4771_v47 }
 0x20b   : > { %3277 = vmatpush3.bf16.msra.mxu1 %v2478_v23 }
 0x20c   : > { %3278 = vmatprep.subr.bf16.mxu1 %v4771_v47 }
 0x20f   : > { %3279 = vmatpush3.bf16.msra.mxu1 %v2479_v8 }
 0x212   : > { %3281 = vmatmul.mubr.bf16.vlgmr.msra.gmra.mrb[60].mxu1 %v3565_v20 }
 0x213   : > { %3284 = vmatprep.mubr.msk.bf16.mxu1 %vm3671_vm5, %v4771_v47 }
 0x21a   : > { %3285 = vmatmul.mubr.bf16.gmra.mrb[64].mxu1 %v3566_v16 }
 0x21b   : > { %3288 = vmatprep.mubr.msk.bf16.mxu1 %vm3671_vm5, %v4771_v47 }
 0x222   : > { %3289 = vmatmul.mubr.bf16.gmra.mrb[68].mxu1 %v3567_v36 }
 0x2e5   : > { %v2530_v55 = vpop.f32.mrb[60].mxu1 }
 0x2e6   : > { %v2531_v25 = vadd.f32 2.220446e-16, %v2530_v55  ;;  %v3282_v32 = vpop.f32.mrb[61].mxu1 }
 0x2e7   : > { %v2533_v49 = vpop.f32.mrb[62].mxu1 }
 0x2e8   : > { %3600 = vlog2.f32 %v2531_v25  ;;  %v2534_v12 = vadd.f32 2.220446e-16, %v2533_v49  ;;  %v3283_v19 = vpop.f32.mrb[63].mxu1 }
 0x2ea   : > { %3602 = vlog2.f32 %v2534_v12 }
 0x2ed   : > { %v2538_v22 = vpop.f32.mrb[64].mxu1 }
 0x2ee   : > { %v2539_v28 = vadd.f32 2.220446e-16, %v2538_v22  ;;  %v3286_v51 = vpop.f32.mrb[65].mxu1 }
 0x2ef   : > { %v2541_v59 = vpop.f32.mrb[66].mxu1 }
 0x2f0   : > { %3604 = vlog2.f32 %v2539_v28  ;;  %v2542_v15 = vadd.f32 2.220446e-16, %v2541_v59  ;;  %v3287_v4 = vpop.f32.mrb[67].mxu1 }
 0x2f2   : > { %v3601_v60 = vpop.eup %3600  ;;  %3606 = vlog2.f32 %v2542_v15 }
 0x2f3   : > { %v2553_v50 = vmul.f32 0.6931472, %v3601_v60 }
 0x2f4   : > { %v3603_v38 = vpop.eup %3602 }
 0x2f5   : > { %2562 = vst [vmem:[%s340_s13] sm:$0xff] %v2553_v50  ;;  %v2555_v40 = vmul.f32 0.6931472, %v3603_v38  ;;  %v2546_v10 = vpop.f32.mrb[68].mxu1 }
 0x2f6   : > { %v2547_v1 = vadd.f32 2.220446e-16, %v2546_v10  ;;  %v3290_v26 = vpop.f32.mrb[69].mxu1 }
 0x2f7   : > { %2563 = vst [vmem:[%s340_s13 + $0x8] sm:$0xff] %v2555_v40  ;;  %v2549_v43 = vpop.f32.mrb[70].mxu1 }
 0x2f8   : > { %3608 = vlog2.f32 %v2547_v1  ;;  %v3291_v62 = vpop.f32.mrb[71].mxu1 }
 0x2fa   : > { %v3605_v58 = vpop.eup %3604 }
 0x2fb   : > { %v2557_v6 = vmul.f32 0.6931472, %v3605_v58 }
 0x2fc   : > { %v3607_v34 = vpop.eup %3606 }
 0x2fd   : > { %2564 = vst [vmem:[%s340_s13 + $0x10] sm:$0xff] %v2557_v6  ;;  %v2559_v54 = vmul.f32 0.6931472, %v3607_v34 }
 0x2ff   : > { %2565 = vst [vmem:[%s340_s13 + $0x18] sm:$0xff] %v2559_v54 }
 0x302   : > { %v3609_v27 = vpop.eup %3608 }
 0x303   : > { %v2561_v61 = vmul.f32 0.6931472, %v3609_v27 }
 0x305   : > { %2566 = vst [vmem:[%s340_s13 + $0x20] sm:$0xff] %v2561_v61 }
 0x306 PF: > { %s16_s20 = sadd.s32 1, %s3664_s20   ;;  %s4772_s18 = smov %s3660_s19 }
 0x307   : > { %p13_p4 = scmp.ge.s32.totalorder %s16_s20, 4   ;;  %s4773_s19 = smov %s4775_s22 }
 0x309   :  { %15 = sbr.rel (!%p13_p4) target bundleno = 2 (0x2), region = 81 }
 0x310   :  { %2594 = vsyncpa [#allocation4], 1 }
 0x311   :  { %2596 = vsyncpa [#allocation4 + $0x1], 1 }

</bundles_post_ra>
